<compile_context>
chip_gen: v5e
topology: v5e:2x2
jax: 0.10.0
libtpu: 0.0.40
codegen_flags: <defaults>
</compile_context>

<pallas_src>
import functools

import jax
import jax.numpy as jnp
from jax.experimental import pallas as pl
from jax.experimental.pallas import tpu as pltpu


# ---------------------------- Pallas kernel ---------------------------------

def _bottleneck_kernel(x_ref, w1_ref, b1_ref, w2_ref, b2_ref, o_ref):
    """Fused Bottleneck forward for one batch block.

    Per grid step:
      x_ref  : (B, C*HW)        activations (conv folded into the GEMM weights)
      w1_ref : (C*HW, latent)   conv1 + Linear1 folded weight
      b1_ref : (1, latent)      folded bias
      w2_ref : (latent, C*HW)   Linear2 + conv2 folded weight
      b2_ref : (1, C*HW)        folded bias
      o_ref  : (B, C*HW)
    """
    x = x_ref[...]
    # Conv1 + Flatten + Linear1 (folded) -> (B, latent); f32 accumulate on MXU.
    z1 = jnp.dot(x, w1_ref[...],
                 preferred_element_type=jnp.float32) + b1_ref[...]
    # Dropout(p=0.1) eval mode -> identity.
    # Linear2 + Reshape + Conv2 (folded) -> (B, C*HW).
    out = jnp.dot(z1.astype(w2_ref.dtype), w2_ref[...],
                  preferred_element_type=jnp.float32) + b2_ref[...]
    o_ref[...] = out.astype(o_ref.dtype)


# ------------------------------ JAX wrapper ----------------------------------

def _choose_batch_block(n):
    # Multiple-of-8 sublane blocks (TPU (8,128) tiling), capped at 128 rows
    # (fully feeds v5e's 128x128 MXU; fine on v6e/v7x).  When there is enough
    # real work, keep >= 2 grid steps so v7x's 2 TensorCores both run.
    if n <= 8:
        return 8
    half = pl.cdiv(n, 2)
    return min(128, 8 * pl.cdiv(half, 8))


def bottleneck_forward(params, x_nchw, *, matmul_dtype=jnp.float32):
    N, C, H, W = x_nchw.shape
    HW = H * W
    D = C * HW

    w1 = params["conv1_w"][:, :, 0, 0]                      # (Cb, C)
    w2 = params["conv2_w"][:, :, 0, 0]                      # (C, Cb)
    Cb = w1.shape[0]
    latent = params["lin1_w"].shape[0]

    # ---- Fold conv1 into Linear1 and conv2 into Linear2 (wrapper-side) ----
    # PyTorch Flatten is NCHW order: flat index = cb*HW + (h*W + w).
    wl1 = params["lin1_w"].reshape(latent, Cb, HW)           # [l, b, s]
    w1_eff = jnp.einsum("bc,lbs->csl", w1, wl1).reshape(D, latent)
    b1_eff = (jnp.einsum("lbs,b->l", wl1, params["conv1_b"])
              + params["lin1_b"])[None, :]                   # (1, latent)

    wl2 = params["lin2_w"].reshape(Cb, HW, latent)           # [b, s, l]
    w2_eff = jnp.einsum("ob,bsl->los", w2, wl2).reshape(latent, D)
    b2_eff = (jnp.einsum("ob,bs->os", w2, params["lin2_b"].reshape(Cb, HW))
              + params["conv2_b"][:, None]).reshape(1, D)    # (1, C*HW)

    w1_eff = w1_eff.astype(matmul_dtype)
    w2_eff = w2_eff.astype(matmul_dtype)
    b1_eff = b1_eff.astype(jnp.float32)
    b2_eff = b2_eff.astype(jnp.float32)

    # ---- Lane-dense, batch-blocked activation layout ----
    x2 = x_nchw.reshape(N, D).astype(matmul_dtype)
    B = _choose_batch_block(N)
    Np = pl.cdiv(N, B) * B
    if Np != N:
        x2 = jnp.pad(x2, ((0, Np - N), (0, 0)))
    grid = (Np // B,)

    # VMEM budget: weights (single logical copy, doubled for pipeline bufs)
    # + double-buffered in/out blocks, with headroom; capped for v7x (64 MiB).
    itemsize = jnp.dtype(matmul_dtype).itemsize
    weight_bytes = (D * latent * itemsize) * 2 + (latent + D) * 4
    io_bytes = 2 * (B * D) * max(itemsize, 4) * 2
    vmem_limit = int(min(max(2 * weight_bytes + io_bytes + (8 << 20), 32 << 20),
                         48 << 20))

    out2 = pl.pallas_call(
        _bottleneck_kernel,
        out_shape=jax.ShapeDtypeStruct((Np, D), jnp.float32),
        grid=grid,
        in_specs=[
            pl.BlockSpec((B, D), lambda n: (n, 0)),
            pl.BlockSpec((D, latent), lambda n: (0, 0)),
            pl.BlockSpec((1, latent), lambda n: (0, 0)),
            pl.BlockSpec((latent, D), lambda n: (0, 0)),
            pl.BlockSpec((1, D), lambda n: (0, 0)),
        ],
        out_specs=pl.BlockSpec((B, D), lambda n: (n, 0)),
        compiler_params=pltpu.CompilerParams(
            dimension_semantics=("parallel",),
            vmem_limit_bytes=vmem_limit),
    )(x2, w1_eff, b1_eff, w2_eff, b2_eff)

    return out2[:N].reshape(N, C, H, W)


# --------------------------- params / reference ------------------------------

def init_params(key, input_size, input_shape, latent=128):
    cb = input_size // 8
    assert cb >= 1, "input_size must be >= 8 (bottle_chan = input_size // 8)"
    hw = input_shape * input_shape
    keys = jax.random.split(key, 8)
    return dict(
        conv1_w=0.1 * jax.random.normal(keys[0], (cb, input_size, 1, 1), jnp.float32),
        conv1_b=0.05 * jax.random.normal(keys[1], (cb,), jnp.float32),
        lin1_w=0.05 * jax.random.normal(keys[2], (latent, cb * hw), jnp.float32),
        lin1_b=0.05 * jax.random.normal(keys[3], (latent,), jnp.float32),
        lin2_w=0.05 * jax.random.normal(keys[4], (cb * hw, latent), jnp.float32),
        lin2_b=0.05 * jax.random.normal(keys[5], (cb * hw,), jnp.float32),
        conv2_w=0.1 * jax.random.normal(keys[6], (input_size, cb, 1, 1), jnp.float32),
        conv2_b=0.05 * jax.random.normal(keys[7], (input_size,), jnp.float32),
    )


def bottleneck_ref(params, x):
    """Pure-JAX reference matching the PyTorch module (eval mode)."""
    N, C, H, W = x.shape
    w1 = params["conv1_w"][:, :, 0, 0]
    cb = w1.shape[0]
    h1 = jnp.einsum("oc,nchw->nohw", w1, x) + params["conv1_b"][None, :, None, None]
    flat = h1.reshape(N, -1)                                # nn.Flatten (NCHW order)
    z1 = flat @ params["lin1_w"].T + params["lin1_b"]       # Linear1 (+ eval dropout)
    z2 = z1 @ params["lin2_w"].T + params["lin2_b"]         # Linear2 (+ eval dropout)
    h2 = z2.reshape(N, cb, H, W)                            # Reshape
    w2 = params["conv2_w"][:, :, 0, 0]
    return jnp.einsum("oc,nchw->nohw", w2, h2) + params["conv2_b"][None, :, None, None]


# --------------------------------- main ---------------------------------------

if __name__ == "__main__":
    input_size = 32        # channels; bottle_chan = input_size // 8 = 4
    input_shape = 8        # spatial size
    latent = 128
    N = 2

    key = jax.random.PRNGKey(0)
    kp, kx = jax.random.split(key)
    params = init_params(kp, input_size, input_shape, latent)
    x = jax.random.normal(kx, (N, input_size, input_shape, input_shape), jnp.float32)

    fwd = jax.jit(functools.partial(bottleneck_forward, matmul_dtype=jnp.float32))
    out = jax.block_until_ready(fwd(params, x))

    assert out.shape == (N, input_size, input_shape, input_shape), out.shape
    ref = bottleneck_ref(params, x)
    err = float(jnp.max(jnp.abs(out - ref)))
    assert jnp.allclose(out, ref, rtol=1e-3, atol=1e-3), err
    print("KERNEL_OK")
</pallas_src>

<mosaic_0001>
module attributes {stable_mosaic.version = 11 : i64} {
  func.func @_bottleneck_kernel(%arg0: i32, %arg1: memref<8x2048xf32, #tpu.memory_space<vmem>>, %arg2: memref<2048x128xf32, #tpu.memory_space<vmem>>, %arg3: memref<1x128xf32, #tpu.memory_space<vmem>>, %arg4: memref<128x2048xf32, #tpu.memory_space<vmem>>, %arg5: memref<1x2048xf32, #tpu.memory_space<vmem>>, %arg6: memref<8x2048xf32, #tpu.memory_space<vmem>>) attributes {dimension_semantics = [#tpu.dimension_semantics<parallel>], iteration_bounds = array<i64: 1>, scalar_prefetch = 0 : i64, scratch_operands = 0 : i64, tpu.core_type = #tpu.core_type<tc>, window_params = [{transform_indices = @transform_0, window_bounds = array<i64: 8, 2048>}, {pipeline_mode = #tpu.pipeline_mode<synchronous>, transform_indices = @transform_1, window_bounds = array<i64: 2048, 128>}, {pipeline_mode = #tpu.pipeline_mode<synchronous>, transform_indices = @transform_2, window_bounds = array<i64: 1, 128>}, {pipeline_mode = #tpu.pipeline_mode<synchronous>, transform_indices = @transform_3, window_bounds = array<i64: 128, 2048>}, {pipeline_mode = #tpu.pipeline_mode<synchronous>, transform_indices = @transform_4, window_bounds = array<i64: 1, 2048>}, {transform_indices = @transform_5, window_bounds = array<i64: 8, 2048>}]} {
    %c0 = arith.constant 0 : index
    %c0_0 = arith.constant 0 : index
    %0 = vector.load %arg1[%c0, %c0_0] : memref<8x2048xf32, #tpu.memory_space<vmem>>, vector<8x2048xf32>
    %c0_1 = arith.constant 0 : index
    %c0_2 = arith.constant 0 : index
    %1 = vector.load %arg2[%c0_1, %c0_2] : memref<2048x128xf32, #tpu.memory_space<vmem>>, vector<2048x128xf32>
    %cst = arith.constant dense<0.000000e+00> : vector<8x128xf32>
    %2 = tpu.matmul %0, %1, %cst {dimension_numbers = #tpu.dot_dimension_numbers<[1], [0], [0], [1], [0, 0, 1, 1], [], []>} : vector<8x2048xf32>, vector<2048x128xf32>, vector<8x128xf32> -> vector<8x128xf32>
    %c0_3 = arith.constant 0 : index
    %c0_4 = arith.constant 0 : index
    %3 = vector.load %arg3[%c0_3, %c0_4] : memref<1x128xf32, #tpu.memory_space<vmem>>, vector<1x128xf32>
    %4 = vector.broadcast %3 : vector<1x128xf32> to vector<8x128xf32>
    %5 = arith.addf %2, %4 : vector<8x128xf32>
    %c0_5 = arith.constant 0 : index
    %c0_6 = arith.constant 0 : index
    %6 = vector.load %arg4[%c0_5, %c0_6] : memref<128x2048xf32, #tpu.memory_space<vmem>>, vector<128x2048xf32>
    %cst_7 = arith.constant dense<0.000000e+00> : vector<8x2048xf32>
    %7 = tpu.matmul %5, %6, %cst_7 {dimension_numbers = #tpu.dot_dimension_numbers<[1], [0], [0], [1], [0, 0, 1, 1], [], []>} : vector<8x128xf32>, vector<128x2048xf32>, vector<8x2048xf32> -> vector<8x2048xf32>
    %c0_8 = arith.constant 0 : index
    %c0_9 = arith.constant 0 : index
    %8 = vector.load %arg5[%c0_8, %c0_9] : memref<1x2048xf32, #tpu.memory_space<vmem>>, vector<1x2048xf32>
    %9 = vector.broadcast %8 : vector<1x2048xf32> to vector<8x2048xf32>
    %10 = arith.addf %7, %9 : vector<8x2048xf32>
    %c0_10 = arith.constant 0 : index
    %c0_11 = arith.constant 0 : index
    %11 = vector.load %arg6[%c0_10, %c0_11] : memref<8x2048xf32, #tpu.memory_space<vmem>>, vector<8x2048xf32>
    tpu.vector_store %arg6[%c0_10, %c0_11], %10 {strides = array<i32>} : memref<8x2048xf32, #tpu.memory_space<vmem>>, vector<8x2048xf32>,
    return
  }
  func.func @transform_0(%arg0: i32) -> (i32, i32) {
    %c0_i32 = arith.constant 0 : i32
    %c0_i32_0 = arith.constant 0 : i32
    return %arg0, %c0_i32 : i32, i32
  }
  func.func @transform_1(%arg0: i32) -> (i32, i32) {
    %c0_i32 = arith.constant 0 : i32
    %c0_i32_0 = arith.constant 0 : i32
    %c0_i32_1 = arith.constant 0 : i32
    return %c0_i32, %c0_i32_0 : i32, i32
  }
  func.func @transform_2(%arg0: i32) -> (i32, i32) {
    %c0_i32 = arith.constant 0 : i32
    %c0_i32_0 = arith.constant 0 : i32
    %c0_i32_1 = arith.constant 0 : i32
    return %c0_i32, %c0_i32_0 : i32, i32
  }
  func.func @transform_3(%arg0: i32) -> (i32, i32) {
    %c0_i32 = arith.constant 0 : i32
    %c0_i32_0 = arith.constant 0 : i32
    %c0_i32_1 = arith.constant 0 : i32
    return %c0_i32, %c0_i32_0 : i32, i32
  }
  func.func @transform_4(%arg0: i32) -> (i32, i32) {
    %c0_i32 = arith.constant 0 : i32
    %c0_i32_0 = arith.constant 0 : i32
    %c0_i32_1 = arith.constant 0 : i32
    return %c0_i32, %c0_i32_0 : i32, i32
  }
  func.func @transform_5(%arg0: i32) -> (i32, i32) {
    %c0_i32 = arith.constant 0 : i32
    %c0_i32_0 = arith.constant 0 : i32
    return %arg0, %c0_i32 : i32, i32
  }
}

</mosaic_0001>

<bundles_post_ra>
// kernel: bottleneck_forward.1
= control target key start
LH: loop header
LB: loop body
LE: loop exit
PB: predicated region body
PF: predicated region fallthrough
CT: control target
= control target key end

     0   :  { %s2938_s1 = inlined_call_operand.vmem [shape: f32[2048,128], index: 1, kind: input, shape index: {}]   ;;  %s2939_s0 = inlined_call_operand.vmem [shape: f32[8,2048], index: 0, kind: input, shape index: {}]   ;;  %s2940_s2 = inlined_call_operand.vmem [shape: f32[1,128], index: 2, kind: input, shape index: {}]   ;;  %s2941_s3 = inlined_call_operand.vmem [shape: f32[128,2048], index: 3, kind: input, shape index: {}]   ;;  %s2942_s4 = inlined_call_operand.vmem [shape: f32[1,2048], index: 4, kind: input, shape index: {}]   ;;  %s2943_s5 = inlined_call_operand.vmem [shape: f32[8,2048], index: 5, kind: output, shape index: {}]  }
   0x1   :  { %v51_v0 = vld [vmem:[%s2938_s1 + $0x78] sm:$0xff]  ;;  %v50_v2 = vld [vmem:[%s2938_s1 + $0x70] sm:$0xff]  ;;  %v49_v6 = vld [vmem:[%s2938_s1 + $0x68] sm:$0xff] }
   0x2   :  { %v83_v1 = vld [vmem:[%s2938_s1 + $0x178] sm:$0xff]  ;;  %296 = vmatpush.msra.mxu0 %v51_v0  ;;  %v82_v4 = vld [vmem:[%s2938_s1 + $0x170] sm:$0xff]  ;;  %v81_v8 = vld [vmem:[%s2938_s1 + $0x168] sm:$0xff] }
   0x3   :  { %336 = vmatpush.msra.mxu2 %v83_v1  ;;  %v67_v3 = vld [vmem:[%s2938_s1 + $0xf8] sm:$0xff]  ;;  %v66_v7 = vld [vmem:[%s2938_s1 + $0xf0] sm:$0xff]  ;;  %v65_v10 = vld [vmem:[%s2938_s1 + $0xe8] sm:$0xff] }
   0x4   :  { %v99_v5 = vld [vmem:[%s2938_s1 + $0x1f8] sm:$0xff]  ;;  %316 = vmatpush.msra.mxu1 %v67_v3  ;;  %297 = vmatpush.msra.mxu0 %v50_v2  ;;  %v98_v9 = vld [vmem:[%s2938_s1 + $0x1f0] sm:$0xff]  ;;  %v48_v11 = vld [vmem:[%s2938_s1 + $0x60] sm:$0xff] }
   0x5   :  { %356 = vmatpush.msra.mxu3 %v99_v5  ;;  %337 = vmatpush.msra.mxu2 %v82_v4  ;;  %v80_v12 = vld [vmem:[%s2938_s1 + $0x160] sm:$0xff]  ;;  %v97_v13 = vld [vmem:[%s2938_s1 + $0x1e8] sm:$0xff]  ;;  %v47_v16 = vld [vmem:[%s2938_s1 + $0x58] sm:$0xff] }
   0x6   :  { %317 = vmatpush.msra.mxu1 %v66_v7  ;;  %298 = vmatpush.msra.mxu0 %v49_v6  ;;  %v64_v14 = vld [vmem:[%s2938_s1 + $0xe0] sm:$0xff]  ;;  %v79_v17 = vld [vmem:[%s2938_s1 + $0x158] sm:$0xff]  ;;  %v46_v20 = vld [vmem:[%s2938_s1 + $0x50] sm:$0xff] }
   0x7   :  { %357 = vmatpush.msra.mxu3 %v98_v9  ;;  %338 = vmatpush.msra.mxu2 %v81_v8  ;;  %v96_v15 = vld [vmem:[%s2938_s1 + $0x1e0] sm:$0xff]  ;;  %v63_v18 = vld [vmem:[%s2938_s1 + $0xd8] sm:$0xff]  ;;  %v78_v21 = vld [vmem:[%s2938_s1 + $0x150] sm:$0xff] }
   0x8   :  { %318 = vmatpush.msra.mxu1 %v65_v10  ;;  %299 = vmatpush.msra.mxu0 %v48_v11  ;;  %v95_v19 = vld [vmem:[%s2938_s1 + $0x1d8] sm:$0xff]  ;;  %v62_v22 = vld [vmem:[%s2938_s1 + $0xd0] sm:$0xff]  ;;  %v45_v24 = vld [vmem:[%s2938_s1 + $0x48] sm:$0xff] }
   0x9   :  { %358 = vmatpush.msra.mxu3 %v97_v13  ;;  %339 = vmatpush.msra.mxu2 %v80_v12  ;;  %v94_v23 = vld [vmem:[%s2938_s1 + $0x1d0] sm:$0xff]  ;;  %v77_v25 = vld [vmem:[%s2938_s1 + $0x148] sm:$0xff]  ;;  %v44_v28 = vld [vmem:[%s2938_s1 + $0x40] sm:$0xff] }
   0xa   :  { %319 = vmatpush.msra.mxu1 %v64_v14  ;;  %300 = vmatpush.msra.mxu0 %v47_v16  ;;  %v61_v26 = vld [vmem:[%s2938_s1 + $0xc8] sm:$0xff]  ;;  %v76_v29 = vld [vmem:[%s2938_s1 + $0x140] sm:$0xff]  ;;  %v43_v32 = vld [vmem:[%s2938_s1 + $0x38] sm:$0xff] }
   0xb   :  { %359 = vmatpush.msra.mxu3 %v96_v15  ;;  %340 = vmatpush.msra.mxu2 %v79_v17  ;;  %v93_v27 = vld [vmem:[%s2938_s1 + $0x1c8] sm:$0xff]  ;;  %v60_v30 = vld [vmem:[%s2938_s1 + $0xc0] sm:$0xff]  ;;  %v75_v33 = vld [vmem:[%s2938_s1 + $0x138] sm:$0xff] }
   0xc   :  { %320 = vmatpush.msra.mxu1 %v63_v18  ;;  %301 = vmatpush.msra.mxu0 %v46_v20  ;;  %v92_v31 = vld [vmem:[%s2938_s1 + $0x1c0] sm:$0xff]  ;;  %v59_v34 = vld [vmem:[%s2938_s1 + $0xb8] sm:$0xff]  ;;  %v42_v36 = vld [vmem:[%s2938_s1 + $0x30] sm:$0xff] }
   0xd   :  { %360 = vmatpush.msra.mxu3 %v95_v19  ;;  %341 = vmatpush.msra.mxu2 %v78_v21  ;;  %v91_v35 = vld [vmem:[%s2938_s1 + $0x1b8] sm:$0xff]  ;;  %v74_v37 = vld [vmem:[%s2938_s1 + $0x130] sm:$0xff]  ;;  %v41_v40 = vld [vmem:[%s2938_s1 + $0x28] sm:$0xff] }
   0xe   :  { %321 = vmatpush.msra.mxu1 %v62_v22  ;;  %302 = vmatpush.msra.mxu0 %v45_v24  ;;  %v58_v38 = vld [vmem:[%s2938_s1 + $0xb0] sm:$0xff]  ;;  %v73_v41 = vld [vmem:[%s2938_s1 + $0x128] sm:$0xff]  ;;  %v40_v44 = vld [vmem:[%s2938_s1 + $0x20] sm:$0xff] }
   0xf   :  { %361 = vmatpush.msra.mxu3 %v94_v23  ;;  %342 = vmatpush.msra.mxu2 %v77_v25  ;;  %v90_v39 = vld [vmem:[%s2938_s1 + $0x1b0] sm:$0xff]  ;;  %v57_v42 = vld [vmem:[%s2938_s1 + $0xa8] sm:$0xff]  ;;  %v72_v45 = vld [vmem:[%s2938_s1 + $0x120] sm:$0xff] }
  0x10   :  { %322 = vmatpush.msra.mxu1 %v61_v26  ;;  %303 = vmatpush.msra.mxu0 %v44_v28  ;;  %v89_v43 = vld [vmem:[%s2938_s1 + $0x1a8] sm:$0xff]  ;;  %v56_v46 = vld [vmem:[%s2938_s1 + $0xa0] sm:$0xff]  ;;  %v39_v48 = vld [vmem:[%s2938_s1 + $0x18] sm:$0xff] }
  0x11   :  { %362 = vmatpush.msra.mxu3 %v93_v27  ;;  %343 = vmatpush.msra.mxu2 %v76_v29  ;;  %v88_v47 = vld [vmem:[%s2938_s1 + $0x1a0] sm:$0xff]  ;;  %v71_v49 = vld [vmem:[%s2938_s1 + $0x118] sm:$0xff]  ;;  %v38_v52 = vld [vmem:[%s2938_s1 + $0x10] sm:$0xff] }
  0x12   :  { %323 = vmatpush.msra.mxu1 %v60_v30  ;;  %304 = vmatpush.msra.mxu0 %v43_v32  ;;  %v55_v50 = vld [vmem:[%s2938_s1 + $0x98] sm:$0xff]  ;;  %v70_v53 = vld [vmem:[%s2938_s1 + $0x110] sm:$0xff]  ;;  %v37_v56 = vld [vmem:[%s2938_s1 + $0x8] sm:$0xff] }
  0x13   :  { %363 = vmatpush.msra.mxu3 %v92_v31  ;;  %344 = vmatpush.msra.mxu2 %v75_v33  ;;  %v87_v51 = vld [vmem:[%s2938_s1 + $0x198] sm:$0xff]  ;;  %v54_v54 = vld [vmem:[%s2938_s1 + $0x90] sm:$0xff]  ;;  %v69_v57 = vld [vmem:[%s2938_s1 + $0x108] sm:$0xff] }
  0x14   :  { %324 = vmatpush.msra.mxu1 %v59_v34  ;;  %305 = vmatpush.msra.mxu0 %v42_v36  ;;  %v86_v55 = vld [vmem:[%s2938_s1 + $0x190] sm:$0xff]  ;;  %v53_v58 = vld [vmem:[%s2938_s1 + $0x88] sm:$0xff]  ;;  %v36_v60 = vld [vmem:[%s2938_s1] sm:$0xff] }
  0x15   :  { %364 = vmatpush.msra.mxu3 %v91_v35  ;;  %345 = vmatpush.msra.mxu2 %v74_v37  ;;  %v85_v59 = vld [vmem:[%s2938_s1 + $0x188] sm:$0xff]  ;;  %v68_v61 = vld [vmem:[%s2938_s1 + $0x100] sm:$0xff]  ;;  %v115_v62 = vld [vmem:[%s2938_s1 + $0x278] sm:$0xff] }
  0x16   :  { %325 = vmatpush.msra.mxu1 %v58_v38  ;;  %306 = vmatpush.msra.mxu0 %v41_v40  ;;  %v147_v63 = vld [vmem:[%s2938_s1 + $0x378] sm:$0xff]  ;;  %v52_v0 = vld [vmem:[%s2938_s1 + $0x80] sm:$0xff]  ;;  %v114_v2 = vld [vmem:[%s2938_s1 + $0x270] sm:$0xff] }
  0x17   :  { %365 = vmatpush.msra.mxu3 %v90_v39  ;;  %346 = vmatpush.msra.mxu2 %v73_v41  ;;  %v84_v1 = vld [vmem:[%s2938_s1 + $0x180] sm:$0xff]  ;;  %v131_v3 = vld [vmem:[%s2938_s1 + $0x2f8] sm:$0xff]  ;;  %v146_v4 = vld [vmem:[%s2938_s1 + $0x370] sm:$0xff] }
  0x18   :  { %326 = vmatpush.msra.mxu1 %v57_v42  ;;  %307 = vmatpush.msra.mxu0 %v40_v44  ;;  %v163_v5 = vld [vmem:[%s2938_s1 + $0x3f8] sm:$0xff]  ;;  %v113_v6 = vld [vmem:[%s2938_s1 + $0x268] sm:$0xff]  ;;  %v130_v7 = vld [vmem:[%s2938_s1 + $0x2f0] sm:$0xff] }
  0x19   :  { %366 = vmatpush.msra.mxu3 %v89_v43  ;;  %347 = vmatpush.msra.mxu2 %v72_v45  ;;  %v145_v8 = vld [vmem:[%s2938_s1 + $0x368] sm:$0xff]  ;;  %v162_v9 = vld [vmem:[%s2938_s1 + $0x3f0] sm:$0xff]  ;;  %v112_v10 = vld [vmem:[%s2938_s1 + $0x260] sm:$0xff] }
  0x1a   :  { %327 = vmatpush.msra.mxu1 %v56_v46  ;;  %308 = vmatpush.msra.mxu0 %v39_v48  ;;  %v129_v11 = vld [vmem:[%s2938_s1 + $0x2e8] sm:$0xff]  ;;  %v144_v12 = vld [vmem:[%s2938_s1 + $0x360] sm:$0xff]  ;;  %v111_v14 = vld [vmem:[%s2938_s1 + $0x258] sm:$0xff] }
  0x1b   :  { %367 = vmatpush.msra.mxu3 %v88_v47  ;;  %348 = vmatpush.msra.mxu2 %v71_v49  ;;  %v161_v13 = vld [vmem:[%s2938_s1 + $0x3e8] sm:$0xff]  ;;  %v128_v15 = vld [vmem:[%s2938_s1 + $0x2e0] sm:$0xff]  ;;  %v143_v16 = vld [vmem:[%s2938_s1 + $0x358] sm:$0xff] }
  0x1c   :  { %328 = vmatpush.msra.mxu1 %v55_v50  ;;  %309 = vmatpush.msra.mxu0 %v38_v52  ;;  %v160_v17 = vld [vmem:[%s2938_s1 + $0x3e0] sm:$0xff]  ;;  %v110_v18 = vld [vmem:[%s2938_s1 + $0x250] sm:$0xff]  ;;  %v127_v19 = vld [vmem:[%s2938_s1 + $0x2d8] sm:$0xff] }
  0x1d   :  { %368 = vmatpush.msra.mxu3 %v87_v51  ;;  %349 = vmatpush.msra.mxu2 %v70_v53  ;;  %v142_v20 = vld [vmem:[%s2938_s1 + $0x350] sm:$0xff]  ;;  %v159_v21 = vld [vmem:[%s2938_s1 + $0x3d8] sm:$0xff]  ;;  %v109_v22 = vld [vmem:[%s2938_s1 + $0x248] sm:$0xff] }
  0x1e   :  { %329 = vmatpush.msra.mxu1 %v54_v54  ;;  %310 = vmatpush.msra.mxu0 %v37_v56  ;;  %v126_v23 = vld [vmem:[%s2938_s1 + $0x2d0] sm:$0xff]  ;;  %v141_v24 = vld [vmem:[%s2938_s1 + $0x348] sm:$0xff]  ;;  %v108_v26 = vld [vmem:[%s2938_s1 + $0x240] sm:$0xff] }
  0x1f   :  { %369 = vmatpush.msra.mxu3 %v86_v55  ;;  %350 = vmatpush.msra.mxu2 %v69_v57  ;;  %v158_v25 = vld [vmem:[%s2938_s1 + $0x3d0] sm:$0xff]  ;;  %v125_v27 = vld [vmem:[%s2938_s1 + $0x2c8] sm:$0xff]  ;;  %v140_v28 = vld [vmem:[%s2938_s1 + $0x340] sm:$0xff] }
  0x20   :  { %330 = vmatpush.msra.mxu1 %v53_v58  ;;  %311 = vmatpush.msra.mxu0 %v36_v60  ;;  %v157_v29 = vld [vmem:[%s2938_s1 + $0x3c8] sm:$0xff]  ;;  %v107_v30 = vld [vmem:[%s2938_s1 + $0x238] sm:$0xff]  ;;  %v124_v31 = vld [vmem:[%s2938_s1 + $0x2c0] sm:$0xff] }
  0x21   :  { %370 = vmatpush.msra.mxu3 %v85_v59  ;;  %351 = vmatpush.msra.mxu2 %v68_v61  ;;  %v139_v32 = vld [vmem:[%s2938_s1 + $0x338] sm:$0xff]  ;;  %v156_v33 = vld [vmem:[%s2938_s1 + $0x3c0] sm:$0xff]  ;;  %v106_v34 = vld [vmem:[%s2938_s1 + $0x230] sm:$0xff] }
  0x22   :  { %376 = vmatpush.msrb.mxu0 %v115_v62  ;;  %331 = vmatpush.msra.mxu1 %v52_v0  ;;  %v123_v35 = vld [vmem:[%s2938_s1 + $0x2b8] sm:$0xff]  ;;  %v138_v36 = vld [vmem:[%s2938_s1 + $0x330] sm:$0xff]  ;;  %v105_v38 = vld [vmem:[%s2938_s1 + $0x228] sm:$0xff] }
  0x23   :  { %416 = vmatpush.msrb.mxu2 %v147_v63  ;;  %371 = vmatpush.msra.mxu3 %v84_v1  ;;  %v155_v37 = vld [vmem:[%s2938_s1 + $0x3b8] sm:$0xff]  ;;  %v122_v39 = vld [vmem:[%s2938_s1 + $0x2b0] sm:$0xff]  ;;  %v137_v40 = vld [vmem:[%s2938_s1 + $0x328] sm:$0xff] }
  0x24   :  { %377 = vmatpush.msrb.mxu0 %v114_v2  ;;  %396 = vmatpush.msrb.mxu1 %v131_v3  ;;  %v154_v41 = vld [vmem:[%s2938_s1 + $0x3b0] sm:$0xff]  ;;  %v104_v42 = vld [vmem:[%s2938_s1 + $0x220] sm:$0xff]  ;;  %v121_v43 = vld [vmem:[%s2938_s1 + $0x2a8] sm:$0xff] }
  0x25   :  { %417 = vmatpush.msrb.mxu2 %v146_v4  ;;  %436 = vmatpush.msrb.mxu3 %v163_v5  ;;  %v136_v44 = vld [vmem:[%s2938_s1 + $0x320] sm:$0xff]  ;;  %v153_v45 = vld [vmem:[%s2938_s1 + $0x3a8] sm:$0xff]  ;;  %v103_v46 = vld [vmem:[%s2938_s1 + $0x218] sm:$0xff] }
  0x26   :  { %378 = vmatpush.msrb.mxu0 %v113_v6  ;;  %397 = vmatpush.msrb.mxu1 %v130_v7  ;;  %v120_v47 = vld [vmem:[%s2938_s1 + $0x2a0] sm:$0xff]  ;;  %v135_v48 = vld [vmem:[%s2938_s1 + $0x318] sm:$0xff]  ;;  %v102_v50 = vld [vmem:[%s2938_s1 + $0x210] sm:$0xff] }
  0x27   :  { %418 = vmatpush.msrb.mxu2 %v145_v8  ;;  %437 = vmatpush.msrb.mxu3 %v162_v9  ;;  %v152_v49 = vld [vmem:[%s2938_s1 + $0x3a0] sm:$0xff]  ;;  %v119_v51 = vld [vmem:[%s2938_s1 + $0x298] sm:$0xff]  ;;  %v134_v52 = vld [vmem:[%s2938_s1 + $0x310] sm:$0xff] }
  0x28   :  { %379 = vmatpush.msrb.mxu0 %v112_v10  ;;  %398 = vmatpush.msrb.mxu1 %v129_v11  ;;  %v151_v53 = vld [vmem:[%s2938_s1 + $0x398] sm:$0xff]  ;;  %v101_v54 = vld [vmem:[%s2938_s1 + $0x208] sm:$0xff]  ;;  %v118_v55 = vld [vmem:[%s2938_s1 + $0x290] sm:$0xff] }
  0x29   :  { %419 = vmatpush.msrb.mxu2 %v144_v12  ;;  %438 = vmatpush.msrb.mxu3 %v161_v13  ;;  %v133_v56 = vld [vmem:[%s2938_s1 + $0x308] sm:$0xff]  ;;  %v150_v57 = vld [vmem:[%s2938_s1 + $0x390] sm:$0xff]  ;;  %v100_v58 = vld [vmem:[%s2938_s1 + $0x200] sm:$0xff] }
  0x2a   :  { %380 = vmatpush.msrb.mxu0 %v111_v14  ;;  %399 = vmatpush.msrb.mxu1 %v128_v15  ;;  %v117_v59 = vld [vmem:[%s2938_s1 + $0x288] sm:$0xff]  ;;  %v132_v60 = vld [vmem:[%s2938_s1 + $0x300] sm:$0xff]  ;;  %v22_v63 = vld [vmem:[%s2939_s0 + $0x10] sm:$0xff] }
  0x2b   :  { %420 = vmatpush.msrb.mxu2 %v143_v16  ;;  %439 = vmatpush.msrb.mxu3 %v160_v17  ;;  %v149_v61 = vld [vmem:[%s2938_s1 + $0x388] sm:$0xff]  ;;  %v20_v62 = vld [vmem:[%s2939_s0] sm:$0xff]  ;;  %v179_v0 = vld [vmem:[%s2938_s1 + $0x478] sm:$0xff] }
  0x2c   :  { %381 = vmatpush.msrb.mxu0 %v110_v18  ;;  %400 = vmatpush.msrb.mxu1 %v127_v19  ;;  %v211_v1 = vld [vmem:[%s2938_s1 + $0x578] sm:$0xff]  ;;  %v116_v2 = vld [vmem:[%s2938_s1 + $0x280] sm:$0xff]  ;;  %v21_v4 = vld [vmem:[%s2939_s0 + $0x8] sm:$0xff] }
  0x2d   :  { %421 = vmatpush.msrb.mxu2 %v142_v20  ;;  %440 = vmatpush.msrb.mxu3 %v159_v21  ;;  %v148_v3 = vld [vmem:[%s2938_s1 + $0x380] sm:$0xff]  ;;  %v23_v5 = vld [vmem:[%s2939_s0 + $0x18] sm:$0xff]  ;;  %v178_v6 = vld [vmem:[%s2938_s1 + $0x470] sm:$0xff] }
  0x2e   :  { %382 = vmatpush.msrb.mxu0 %v109_v22  ;;  %401 = vmatpush.msrb.mxu1 %v126_v23  ;;  %v195_v7 = vld [vmem:[%s2938_s1 + $0x4f8] sm:$0xff]  ;;  %v210_v8 = vld [vmem:[%s2938_s1 + $0x570] sm:$0xff]  ;;  %v177_v10 = vld [vmem:[%s2938_s1 + $0x468] sm:$0xff] }
  0x2f   :  { %422 = vmatpush.msrb.mxu2 %v141_v24  ;;  %441 = vmatpush.msrb.mxu3 %v158_v25  ;;  %v227_v9 = vld [vmem:[%s2938_s1 + $0x5f8] sm:$0xff]  ;;  %v194_v11 = vld [vmem:[%s2938_s1 + $0x4f0] sm:$0xff]  ;;  %v209_v12 = vld [vmem:[%s2938_s1 + $0x568] sm:$0xff] }
  0x30   :  { %383 = vmatpush.msrb.mxu0 %v108_v26  ;;  %402 = vmatpush.msrb.mxu1 %v125_v27  ;;  %v226_v13 = vld [vmem:[%s2938_s1 + $0x5f0] sm:$0xff]  ;;  %v176_v14 = vld [vmem:[%s2938_s1 + $0x460] sm:$0xff]  ;;  %v193_v15 = vld [vmem:[%s2938_s1 + $0x4e8] sm:$0xff] }
  0x31   :  { %423 = vmatpush.msrb.mxu2 %v140_v28  ;;  %442 = vmatpush.msrb.mxu3 %v157_v29  ;;  %v208_v16 = vld [vmem:[%s2938_s1 + $0x560] sm:$0xff]  ;;  %v225_v17 = vld [vmem:[%s2938_s1 + $0x5e8] sm:$0xff]  ;;  %v26_v18 = vld [vmem:[%s2939_s0 + $0x30] sm:$0xff] }
  0x32   :  { %384 = vmatpush.msrb.mxu0 %v107_v30  ;;  %403 = vmatpush.msrb.mxu1 %v124_v31  ;;  %v175_v19 = vld [vmem:[%s2938_s1 + $0x458] sm:$0xff]  ;;  %v192_v20 = vld [vmem:[%s2938_s1 + $0x4e0] sm:$0xff]  ;;  %v174_v25 = vld [vmem:[%s2938_s1 + $0x450] sm:$0xff] }
  0x33   :  { %424 = vmatpush.msrb.mxu2 %v139_v32  ;;  %443 = vmatpush.msrb.mxu3 %v156_v33  ;;  %v207_v21 = vld [vmem:[%s2938_s1 + $0x558] sm:$0xff]  ;;  %v224_v22 = vld [vmem:[%s2938_s1 + $0x5e0] sm:$0xff]  ;;  %v206_v27 = vld [vmem:[%s2938_s1 + $0x550] sm:$0xff] }
  0x34   :  { %385 = vmatpush.msrb.mxu0 %v106_v34  ;;  %404 = vmatpush.msrb.mxu1 %v123_v35  ;;  %v24_v23 = vld [vmem:[%s2939_s0 + $0x20] sm:$0xff]  ;;  %v27_v24 = vld [vmem:[%s2939_s0 + $0x38] sm:$0xff]  ;;  %v25_v29 = vld [vmem:[%s2939_s0 + $0x28] sm:$0xff] }
  0x35   :  { %425 = vmatpush.msrb.mxu2 %v138_v36  ;;  %444 = vmatpush.msrb.mxu3 %v155_v37  ;;  %v191_v26 = vld [vmem:[%s2938_s1 + $0x4d8] sm:$0xff]  ;;  %v173_v30 = vld [vmem:[%s2938_s1 + $0x448] sm:$0xff]  ;;  %v190_v31 = vld [vmem:[%s2938_s1 + $0x4d0] sm:$0xff] }
  0x36   :  { %386 = vmatpush.msrb.mxu0 %v105_v38  ;;  %405 = vmatpush.msrb.mxu1 %v122_v39  ;;  %v223_v28 = vld [vmem:[%s2938_s1 + $0x5d8] sm:$0xff]  ;;  %v205_v32 = vld [vmem:[%s2938_s1 + $0x548] sm:$0xff]  ;;  %v222_v33 = vld [vmem:[%s2938_s1 + $0x5d0] sm:$0xff] }
  0x37   :  { %426 = vmatpush.msrb.mxu2 %v137_v40  ;;  %445 = vmatpush.msrb.mxu3 %v154_v41  ;;  %v172_v34 = vld [vmem:[%s2938_s1 + $0x440] sm:$0xff]  ;;  %v189_v35 = vld [vmem:[%s2938_s1 + $0x4c8] sm:$0xff]  ;;  %v171_v38 = vld [vmem:[%s2938_s1 + $0x438] sm:$0xff] }
  0x38   :  { %387 = vmatpush.msrb.mxu0 %v104_v42  ;;  %406 = vmatpush.msrb.mxu1 %v121_v43  ;;  %v204_v36 = vld [vmem:[%s2938_s1 + $0x540] sm:$0xff]  ;;  %v221_v37 = vld [vmem:[%s2938_s1 + $0x5c8] sm:$0xff]  ;;  %v203_v40 = vld [vmem:[%s2938_s1 + $0x538] sm:$0xff] }
  0x39   :  { %427 = vmatpush.msrb.mxu2 %v136_v44  ;;  %446 = vmatpush.msrb.mxu3 %v153_v45  ;;  %v188_v39 = vld [vmem:[%s2938_s1 + $0x4c0] sm:$0xff]  ;;  %v170_v42 = vld [vmem:[%s2938_s1 + $0x430] sm:$0xff]  ;;  %v187_v43 = vld [vmem:[%s2938_s1 + $0x4b8] sm:$0xff] }
  0x3a   :  { %388 = vmatpush.msrb.mxu0 %v103_v46  ;;  %407 = vmatpush.msrb.mxu1 %v120_v47  ;;  %v220_v41 = vld [vmem:[%s2938_s1 + $0x5c0] sm:$0xff]  ;;  %v202_v44 = vld [vmem:[%s2938_s1 + $0x530] sm:$0xff]  ;;  %v219_v45 = vld [vmem:[%s2938_s1 + $0x5b8] sm:$0xff] }
  0x3b   :  { %428 = vmatpush.msrb.mxu2 %v135_v48  ;;  %447 = vmatpush.msrb.mxu3 %v152_v49  ;;  %v169_v46 = vld [vmem:[%s2938_s1 + $0x428] sm:$0xff]  ;;  %v186_v47 = vld [vmem:[%s2938_s1 + $0x4b0] sm:$0xff] }
  0x3c   :  { %389 = vmatpush.msrb.mxu0 %v102_v50  ;;  %408 = vmatpush.msrb.mxu1 %v119_v51  ;;  %v201_v48 = vld [vmem:[%s2938_s1 + $0x528] sm:$0xff]  ;;  %v218_v49 = vld [vmem:[%s2938_s1 + $0x5b0] sm:$0xff]  ;;  %v168_v50 = vld [vmem:[%s2938_s1 + $0x420] sm:$0xff] }
  0x3d   :  { %429 = vmatpush.msrb.mxu2 %v134_v52  ;;  %448 = vmatpush.msrb.mxu3 %v151_v53  ;;  %v185_v51 = vld [vmem:[%s2938_s1 + $0x4a8] sm:$0xff]  ;;  %v200_v52 = vld [vmem:[%s2938_s1 + $0x520] sm:$0xff] }
  0x3e   :  { %390 = vmatpush.msrb.mxu0 %v101_v54  ;;  %409 = vmatpush.msrb.mxu1 %v118_v55  ;;  %v217_v53 = vld [vmem:[%s2938_s1 + $0x5a8] sm:$0xff]  ;;  %v167_v54 = vld [vmem:[%s2938_s1 + $0x418] sm:$0xff]  ;;  %v184_v55 = vld [vmem:[%s2938_s1 + $0x4a0] sm:$0xff] }
  0x3f   :  { %430 = vmatpush.msrb.mxu2 %v133_v56  ;;  %449 = vmatpush.msrb.mxu3 %v150_v57  ;;  %v199_v56 = vld [vmem:[%s2938_s1 + $0x518] sm:$0xff]  ;;  %v216_v57 = vld [vmem:[%s2938_s1 + $0x5a0] sm:$0xff] }
  0x40   :  { %391 = vmatpush.msrb.mxu0 %v100_v58  ;;  %410 = vmatpush.msrb.mxu1 %v117_v59  ;;  %v166_v58 = vld [vmem:[%s2938_s1 + $0x410] sm:$0xff]  ;;  %v183_v59 = vld [vmem:[%s2938_s1 + $0x498] sm:$0xff] }
  0x41   :  { %431 = vmatpush.msrb.mxu2 %v132_v60  ;;  %450 = vmatpush.msrb.mxu3 %v149_v61  ;;  %v198_v60 = vld [vmem:[%s2938_s1 + $0x510] sm:$0xff]  ;;  %v215_v61 = vld [vmem:[%s2938_s1 + $0x598] sm:$0xff] }
  0x42   :  { %312 = vmatmul.f32.vlgmr.msra.gmra.mxu0 %v20_v62  ;;  %352 = vmatmul.f32.vlgmr.msra.gmra.mxu2 %v22_v63  ;;  %v165_v62 = vld [vmem:[%s2938_s1 + $0x408] sm:$0xff]  ;;  %v182_v63 = vld [vmem:[%s2938_s1 + $0x490] sm:$0xff] }
  0x43   :  { %456 = vmatpush.msra.mxu0 %v179_v0  ;;  %496 = vmatpush.msra.mxu2 %v211_v1  ;;  %v197_v0 = vld [vmem:[%s2938_s1 + $0x508] sm:$0xff]  ;;  %v214_v1 = vld [vmem:[%s2938_s1 + $0x590] sm:$0xff] }
  0x44   :  { %411 = vmatpush.msrb.mxu1 %v116_v2  ;;  %451 = vmatpush.msrb.mxu3 %v148_v3  ;;  %v164_v2 = vld [vmem:[%s2938_s1 + $0x400] sm:$0xff]  ;;  %v181_v3 = vld [vmem:[%s2938_s1 + $0x488] sm:$0xff] }
  0x45   :  { %332 = vmatmul.f32.vlgmr.msra.gmra.mxu1 %v21_v4  ;;  %372 = vmatmul.f32.vlgmr.msra.gmra.mxu3 %v23_v5  ;;  %v196_v4 = vld [vmem:[%s2938_s1 + $0x500] sm:$0xff]  ;;  %v213_v5 = vld [vmem:[%s2938_s1 + $0x588] sm:$0xff] }
  0x46   :  { %457 = vmatpush.msra.mxu0 %v178_v6  ;;  %476 = vmatpush.msra.mxu1 %v195_v7  ;;  %v28_v6 = vld [vmem:[%s2939_s0 + $0x40] sm:$0xff]  ;;  %v30_v7 = vld [vmem:[%s2939_s0 + $0x50] sm:$0xff] }
  0x47   :  { %497 = vmatpush.msra.mxu2 %v210_v8  ;;  %516 = vmatpush.msra.mxu3 %v227_v9  ;;  %v243_v8 = vld [vmem:[%s2938_s1 + $0x678] sm:$0xff] }
  0x48   :  { %458 = vmatpush.msra.mxu0 %v177_v10  ;;  %477 = vmatpush.msra.mxu1 %v194_v11  ;;  %v275_v9 = vld [vmem:[%s2938_s1 + $0x778] sm:$0xff]  ;;  %v180_v10 = vld [vmem:[%s2938_s1 + $0x480] sm:$0xff] }
  0x49   :  { %498 = vmatpush.msra.mxu2 %v209_v12  ;;  %517 = vmatpush.msra.mxu3 %v226_v13  ;;  %v212_v11 = vld [vmem:[%s2938_s1 + $0x580] sm:$0xff]  ;;  %v29_v12 = vld [vmem:[%s2939_s0 + $0x48] sm:$0xff]  ;;  %v31_v13 = vld [vmem:[%s2939_s0 + $0x58] sm:$0xff] }
  0x4a   :  { %459 = vmatpush.msra.mxu0 %v176_v14  ;;  %478 = vmatpush.msra.mxu1 %v193_v15  ;;  %v242_v14 = vld [vmem:[%s2938_s1 + $0x670] sm:$0xff]  ;;  %v259_v15 = vld [vmem:[%s2938_s1 + $0x6f8] sm:$0xff] }
  0x4b   :  { %499 = vmatpush.msra.mxu2 %v208_v16  ;;  %518 = vmatpush.msra.mxu3 %v225_v17  ;;  %v274_v16 = vld [vmem:[%s2938_s1 + $0x770] sm:$0xff]  ;;  %v291_v17 = vld [vmem:[%s2938_s1 + $0x7f8] sm:$0xff] }
  0x4c   :  { %432 = vmatmul.f32.vlgmr.msrb.gmra.mxu2 %v26_v18  ;;  %460 = vmatpush.msra.mxu0 %v175_v19  ;;  %v241_v18 = vld [vmem:[%s2938_s1 + $0x668] sm:$0xff]  ;;  %v258_v19 = vld [vmem:[%s2938_s1 + $0x6f0] sm:$0xff] }
  0x4d   :  { %479 = vmatpush.msra.mxu1 %v192_v20  ;;  %500 = vmatpush.msra.mxu2 %v207_v21  ;;  %v273_v20 = vld [vmem:[%s2938_s1 + $0x768] sm:$0xff]  ;;  %v290_v21 = vld [vmem:[%s2938_s1 + $0x7f0] sm:$0xff] }
  0x4e   :  { %519 = vmatpush.msra.mxu3 %v224_v22  ;;  %392 = vmatmul.f32.vlgmr.msrb.gmra.mxu0 %v24_v23  ;;  %v240_v22 = vld [vmem:[%s2938_s1 + $0x660] sm:$0xff]  ;;  %v257_v23 = vld [vmem:[%s2938_s1 + $0x6e8] sm:$0xff] }
  0x4f   :  { %452 = vmatmul.f32.vlgmr.msrb.gmra.mxu3 %v27_v24  ;;  %461 = vmatpush.msra.mxu0 %v174_v25  ;;  %v272_v24 = vld [vmem:[%s2938_s1 + $0x760] sm:$0xff]  ;;  %v289_v25 = vld [vmem:[%s2938_s1 + $0x7e8] sm:$0xff] }
  0x50   :  { %480 = vmatpush.msra.mxu1 %v191_v26  ;;  %501 = vmatpush.msra.mxu2 %v206_v27  ;;  %v239_v26 = vld [vmem:[%s2938_s1 + $0x658] sm:$0xff]  ;;  %v256_v27 = vld [vmem:[%s2938_s1 + $0x6e0] sm:$0xff] }
  0x51   :  { %520 = vmatpush.msra.mxu3 %v223_v28  ;;  %412 = vmatmul.f32.vlgmr.msrb.gmra.mxu1 %v25_v29  ;;  %v271_v28 = vld [vmem:[%s2938_s1 + $0x758] sm:$0xff]  ;;  %v288_v29 = vld [vmem:[%s2938_s1 + $0x7e0] sm:$0xff] }
  0x52   :  { %462 = vmatpush.msra.mxu0 %v173_v30  ;;  %481 = vmatpush.msra.mxu1 %v190_v31  ;;  %v238_v30 = vld [vmem:[%s2938_s1 + $0x650] sm:$0xff]  ;;  %v255_v31 = vld [vmem:[%s2938_s1 + $0x6d8] sm:$0xff] }
  0x53   :  { %502 = vmatpush.msra.mxu2 %v205_v32  ;;  %521 = vmatpush.msra.mxu3 %v222_v33  ;;  %v270_v32 = vld [vmem:[%s2938_s1 + $0x750] sm:$0xff]  ;;  %v287_v33 = vld [vmem:[%s2938_s1 + $0x7d8] sm:$0xff] }
  0x54   :  { %463 = vmatpush.msra.mxu0 %v172_v34  ;;  %482 = vmatpush.msra.mxu1 %v189_v35  ;;  %v237_v34 = vld [vmem:[%s2938_s1 + $0x648] sm:$0xff]  ;;  %v254_v35 = vld [vmem:[%s2938_s1 + $0x6d0] sm:$0xff] }
  0x55   :  { %503 = vmatpush.msra.mxu2 %v204_v36  ;;  %522 = vmatpush.msra.mxu3 %v221_v37  ;;  %v269_v36 = vld [vmem:[%s2938_s1 + $0x748] sm:$0xff]  ;;  %v286_v37 = vld [vmem:[%s2938_s1 + $0x7d0] sm:$0xff] }
  0x56   :  { %464 = vmatpush.msra.mxu0 %v171_v38  ;;  %483 = vmatpush.msra.mxu1 %v188_v39  ;;  %v236_v38 = vld [vmem:[%s2938_s1 + $0x640] sm:$0xff]  ;;  %v253_v39 = vld [vmem:[%s2938_s1 + $0x6c8] sm:$0xff] }
  0x57   :  { %504 = vmatpush.msra.mxu2 %v203_v40  ;;  %523 = vmatpush.msra.mxu3 %v220_v41  ;;  %v268_v40 = vld [vmem:[%s2938_s1 + $0x740] sm:$0xff]  ;;  %v285_v41 = vld [vmem:[%s2938_s1 + $0x7c8] sm:$0xff] }
  0x58   :  { %465 = vmatpush.msra.mxu0 %v170_v42  ;;  %484 = vmatpush.msra.mxu1 %v187_v43  ;;  %v235_v42 = vld [vmem:[%s2938_s1 + $0x638] sm:$0xff]  ;;  %v252_v43 = vld [vmem:[%s2938_s1 + $0x6c0] sm:$0xff] }
  0x59   :  { %505 = vmatpush.msra.mxu2 %v202_v44  ;;  %524 = vmatpush.msra.mxu3 %v219_v45  ;;  %v267_v44 = vld [vmem:[%s2938_s1 + $0x738] sm:$0xff]  ;;  %v284_v45 = vld [vmem:[%s2938_s1 + $0x7c0] sm:$0xff] }
  0x5a   :  { %466 = vmatpush.msra.mxu0 %v169_v46  ;;  %485 = vmatpush.msra.mxu1 %v186_v47  ;;  %v234_v46 = vld [vmem:[%s2938_s1 + $0x630] sm:$0xff]  ;;  %v251_v47 = vld [vmem:[%s2938_s1 + $0x6b8] sm:$0xff] }
  0x5b   :  { %506 = vmatpush.msra.mxu2 %v201_v48  ;;  %525 = vmatpush.msra.mxu3 %v218_v49  ;;  %v266_v48 = vld [vmem:[%s2938_s1 + $0x730] sm:$0xff]  ;;  %v283_v49 = vld [vmem:[%s2938_s1 + $0x7b8] sm:$0xff] }
  0x5c   :  { %467 = vmatpush.msra.mxu0 %v168_v50  ;;  %486 = vmatpush.msra.mxu1 %v185_v51  ;;  %v233_v50 = vld [vmem:[%s2938_s1 + $0x628] sm:$0xff]  ;;  %v250_v51 = vld [vmem:[%s2938_s1 + $0x6b0] sm:$0xff] }
  0x5d   :  { %507 = vmatpush.msra.mxu2 %v200_v52  ;;  %526 = vmatpush.msra.mxu3 %v217_v53  ;;  %v265_v52 = vld [vmem:[%s2938_s1 + $0x728] sm:$0xff]  ;;  %v282_v53 = vld [vmem:[%s2938_s1 + $0x7b0] sm:$0xff] }
  0x5e   :  { %468 = vmatpush.msra.mxu0 %v167_v54  ;;  %487 = vmatpush.msra.mxu1 %v184_v55  ;;  %v232_v54 = vld [vmem:[%s2938_s1 + $0x620] sm:$0xff]  ;;  %v249_v55 = vld [vmem:[%s2938_s1 + $0x6a8] sm:$0xff] }
  0x5f   :  { %508 = vmatpush.msra.mxu2 %v199_v56  ;;  %527 = vmatpush.msra.mxu3 %v216_v57  ;;  %v264_v56 = vld [vmem:[%s2938_s1 + $0x720] sm:$0xff]  ;;  %v281_v57 = vld [vmem:[%s2938_s1 + $0x7a8] sm:$0xff] }
  0x60   :  { %469 = vmatpush.msra.mxu0 %v166_v58  ;;  %488 = vmatpush.msra.mxu1 %v183_v59  ;;  %v231_v58 = vld [vmem:[%s2938_s1 + $0x618] sm:$0xff]  ;;  %v248_v59 = vld [vmem:[%s2938_s1 + $0x6a0] sm:$0xff] }
  0x61   :  { %509 = vmatpush.msra.mxu2 %v198_v60  ;;  %528 = vmatpush.msra.mxu3 %v215_v61  ;;  %v263_v60 = vld [vmem:[%s2938_s1 + $0x718] sm:$0xff]  ;;  %v280_v61 = vld [vmem:[%s2938_s1 + $0x7a0] sm:$0xff] }
  0x62   :  { %470 = vmatpush.msra.mxu0 %v165_v62  ;;  %489 = vmatpush.msra.mxu1 %v182_v63  ;;  %v230_v62 = vld [vmem:[%s2938_s1 + $0x610] sm:$0xff]  ;;  %v247_v63 = vld [vmem:[%s2938_s1 + $0x698] sm:$0xff] }
  0x63   :  { %510 = vmatpush.msra.mxu2 %v197_v0  ;;  %529 = vmatpush.msra.mxu3 %v214_v1  ;;  %v262_v0 = vld [vmem:[%s2938_s1 + $0x710] sm:$0xff]  ;;  %v279_v1 = vld [vmem:[%s2938_s1 + $0x798] sm:$0xff] }
  0x64   :  { %471 = vmatpush.msra.mxu0 %v164_v2  ;;  %490 = vmatpush.msra.mxu1 %v181_v3  ;;  %v229_v2 = vld [vmem:[%s2938_s1 + $0x608] sm:$0xff]  ;;  %v246_v3 = vld [vmem:[%s2938_s1 + $0x690] sm:$0xff] }
  0x65   :  { %511 = vmatpush.msra.mxu2 %v196_v4  ;;  %530 = vmatpush.msra.mxu3 %v213_v5  ;;  %v261_v4 = vld [vmem:[%s2938_s1 + $0x708] sm:$0xff]  ;;  %v278_v5 = vld [vmem:[%s2938_s1 + $0x790] sm:$0xff] }
  0x66   :  { %472 = vmatmul.f32.vlgmr.msra.gmra.mxu0 %v28_v6  ;;  %512 = vmatmul.f32.vlgmr.msra.gmra.mxu2 %v30_v7  ;;  %v228_v6 = vld [vmem:[%s2938_s1 + $0x600] sm:$0xff]  ;;  %v245_v7 = vld [vmem:[%s2938_s1 + $0x688] sm:$0xff] }
  0x67   :  { %536 = vmatpush.msrb.mxu0 %v243_v8  ;;  %576 = vmatpush.msrb.mxu2 %v275_v9  ;;  %v260_v8 = vld [vmem:[%s2938_s1 + $0x700] sm:$0xff]  ;;  %v277_v9 = vld [vmem:[%s2938_s1 + $0x788] sm:$0xff] }
  0x68   :  { %491 = vmatpush.msra.mxu1 %v180_v10  ;;  %531 = vmatpush.msra.mxu3 %v212_v11  ;;  %v32_v10 = vld [vmem:[%s2939_s0 + $0x60] sm:$0xff]  ;;  %v34_v11 = vld [vmem:[%s2939_s0 + $0x70] sm:$0xff] }
  0x69   :  { %492 = vmatmul.f32.vlgmr.msra.gmra.mxu1 %v29_v12  ;;  %532 = vmatmul.f32.vlgmr.msra.gmra.mxu3 %v31_v13  ;;  %v244_v12 = vld [vmem:[%s2938_s1 + $0x680] sm:$0xff] }
  0x6a   :  { %537 = vmatpush.msrb.mxu0 %v242_v14  ;;  %556 = vmatpush.msrb.mxu1 %v259_v15  ;;  %v276_v13 = vld [vmem:[%s2938_s1 + $0x780] sm:$0xff]  ;;  %v33_v14 = vld [vmem:[%s2939_s0 + $0x68] sm:$0xff]  ;;  %v35_v15 = vld [vmem:[%s2939_s0 + $0x78] sm:$0xff] }
  0x6b   :  { %577 = vmatpush.msrb.mxu2 %v274_v16  ;;  %596 = vmatpush.msrb.mxu3 %v291_v17  ;;  %v856_v16 = vld [vmem:[%s2941_s3 + $0x780] sm:$0xff]  ;;  %v857_v17 = vld [vmem:[%s2941_s3 + $0x788] sm:$0xff] }
  0x6c   :  { %538 = vmatpush.msrb.mxu0 %v241_v18  ;;  %557 = vmatpush.msrb.mxu1 %v258_v19  ;;  %v858_v18 = vld [vmem:[%s2941_s3 + $0x790] sm:$0xff]  ;;  %v859_v19 = vld [vmem:[%s2941_s3 + $0x798] sm:$0xff] }
  0x6d   :  { %578 = vmatpush.msrb.mxu2 %v273_v20  ;;  %597 = vmatpush.msrb.mxu3 %v290_v21  ;;  %v840_v20 = vld [vmem:[%s2941_s3 + $0x700] sm:$0xff]  ;;  %v841_v21 = vld [vmem:[%s2941_s3 + $0x708] sm:$0xff] }
  0x6e   :  { %539 = vmatpush.msrb.mxu0 %v240_v22  ;;  %558 = vmatpush.msrb.mxu1 %v257_v23  ;;  %v842_v22 = vld [vmem:[%s2941_s3 + $0x710] sm:$0xff]  ;;  %v843_v23 = vld [vmem:[%s2941_s3 + $0x718] sm:$0xff] }
  0x6f   :  { %579 = vmatpush.msrb.mxu2 %v272_v24  ;;  %598 = vmatpush.msrb.mxu3 %v289_v25  ;;  %v824_v24 = vld [vmem:[%s2941_s3 + $0x680] sm:$0xff]  ;;  %v825_v25 = vld [vmem:[%s2941_s3 + $0x688] sm:$0xff] }
  0x70   :  { %540 = vmatpush.msrb.mxu0 %v239_v26  ;;  %559 = vmatpush.msrb.mxu1 %v256_v27  ;;  %v826_v26 = vld [vmem:[%s2941_s3 + $0x690] sm:$0xff]  ;;  %v827_v27 = vld [vmem:[%s2941_s3 + $0x698] sm:$0xff] }
  0x71   :  { %580 = vmatpush.msrb.mxu2 %v271_v28  ;;  %599 = vmatpush.msrb.mxu3 %v288_v29  ;;  %v808_v28 = vld [vmem:[%s2941_s3 + $0x600] sm:$0xff]  ;;  %v809_v29 = vld [vmem:[%s2941_s3 + $0x608] sm:$0xff] }
  0x72   :  { %541 = vmatpush.msrb.mxu0 %v238_v30  ;;  %560 = vmatpush.msrb.mxu1 %v255_v31  ;;  %v810_v30 = vld [vmem:[%s2941_s3 + $0x610] sm:$0xff]  ;;  %v811_v31 = vld [vmem:[%s2941_s3 + $0x618] sm:$0xff] }
  0x73   :  { %581 = vmatpush.msrb.mxu2 %v270_v32  ;;  %600 = vmatpush.msrb.mxu3 %v287_v33  ;;  %v792_v32 = vld [vmem:[%s2941_s3 + $0x580] sm:$0xff]  ;;  %v793_v33 = vld [vmem:[%s2941_s3 + $0x588] sm:$0xff] }
  0x74   :  { %542 = vmatpush.msrb.mxu0 %v237_v34  ;;  %561 = vmatpush.msrb.mxu1 %v254_v35  ;;  %v794_v34 = vld [vmem:[%s2941_s3 + $0x590] sm:$0xff]  ;;  %v795_v35 = vld [vmem:[%s2941_s3 + $0x598] sm:$0xff] }
  0x75   :  { %582 = vmatpush.msrb.mxu2 %v269_v36  ;;  %601 = vmatpush.msrb.mxu3 %v286_v37  ;;  %v776_v36 = vld [vmem:[%s2941_s3 + $0x500] sm:$0xff]  ;;  %v777_v37 = vld [vmem:[%s2941_s3 + $0x508] sm:$0xff] }
  0x76   :  { %543 = vmatpush.msrb.mxu0 %v236_v38  ;;  %562 = vmatpush.msrb.mxu1 %v253_v39  ;;  %v778_v38 = vld [vmem:[%s2941_s3 + $0x510] sm:$0xff]  ;;  %v779_v39 = vld [vmem:[%s2941_s3 + $0x518] sm:$0xff] }
  0x77   :  { %583 = vmatpush.msrb.mxu2 %v268_v40  ;;  %602 = vmatpush.msrb.mxu3 %v285_v41  ;;  %v760_v40 = vld [vmem:[%s2941_s3 + $0x480] sm:$0xff]  ;;  %v761_v41 = vld [vmem:[%s2941_s3 + $0x488] sm:$0xff] }
  0x78   :  { %544 = vmatpush.msrb.mxu0 %v235_v42  ;;  %563 = vmatpush.msrb.mxu1 %v252_v43  ;;  %v762_v42 = vld [vmem:[%s2941_s3 + $0x490] sm:$0xff]  ;;  %v763_v43 = vld [vmem:[%s2941_s3 + $0x498] sm:$0xff] }
  0x79   :  { %584 = vmatpush.msrb.mxu2 %v267_v44  ;;  %603 = vmatpush.msrb.mxu3 %v284_v45  ;;  %v744_v44 = vld [vmem:[%s2941_s3 + $0x400] sm:$0xff]  ;;  %v745_v45 = vld [vmem:[%s2941_s3 + $0x408] sm:$0xff] }
  0x7a   :  { %545 = vmatpush.msrb.mxu0 %v234_v46  ;;  %564 = vmatpush.msrb.mxu1 %v251_v47  ;;  %v746_v46 = vld [vmem:[%s2941_s3 + $0x410] sm:$0xff]  ;;  %v747_v47 = vld [vmem:[%s2941_s3 + $0x418] sm:$0xff] }
  0x7b   :  { %585 = vmatpush.msrb.mxu2 %v266_v48  ;;  %604 = vmatpush.msrb.mxu3 %v283_v49  ;;  %v728_v48 = vld [vmem:[%s2941_s3 + $0x380] sm:$0xff]  ;;  %v729_v49 = vld [vmem:[%s2941_s3 + $0x388] sm:$0xff] }
  0x7c   :  { %546 = vmatpush.msrb.mxu0 %v233_v50  ;;  %565 = vmatpush.msrb.mxu1 %v250_v51  ;;  %v730_v50 = vld [vmem:[%s2941_s3 + $0x390] sm:$0xff]  ;;  %v731_v51 = vld [vmem:[%s2941_s3 + $0x398] sm:$0xff] }
  0x7d   :  { %586 = vmatpush.msrb.mxu2 %v265_v52  ;;  %605 = vmatpush.msrb.mxu3 %v282_v53  ;;  %v712_v52 = vld [vmem:[%s2941_s3 + $0x300] sm:$0xff]  ;;  %v713_v53 = vld [vmem:[%s2941_s3 + $0x308] sm:$0xff] }
  0x7e   :  { %547 = vmatpush.msrb.mxu0 %v232_v54  ;;  %566 = vmatpush.msrb.mxu1 %v249_v55  ;;  %v714_v54 = vld [vmem:[%s2941_s3 + $0x310] sm:$0xff]  ;;  %v715_v55 = vld [vmem:[%s2941_s3 + $0x318] sm:$0xff] }
  0x7f   :  { %587 = vmatpush.msrb.mxu2 %v264_v56  ;;  %606 = vmatpush.msrb.mxu3 %v281_v57  ;;  %v696_v56 = vld [vmem:[%s2941_s3 + $0x280] sm:$0xff]  ;;  %v697_v57 = vld [vmem:[%s2941_s3 + $0x288] sm:$0xff] }
  0x80   :  { %548 = vmatpush.msrb.mxu0 %v231_v58  ;;  %567 = vmatpush.msrb.mxu1 %v248_v59  ;;  %v698_v58 = vld [vmem:[%s2941_s3 + $0x290] sm:$0xff]  ;;  %v699_v59 = vld [vmem:[%s2941_s3 + $0x298] sm:$0xff] }
  0x81   :  { %588 = vmatpush.msrb.mxu2 %v263_v60  ;;  %607 = vmatpush.msrb.mxu3 %v280_v61  ;;  %v680_v60 = vld [vmem:[%s2941_s3 + $0x200] sm:$0xff]  ;;  %v681_v61 = vld [vmem:[%s2941_s3 + $0x208] sm:$0xff] }
  0x82   :  { %549 = vmatpush.msrb.mxu0 %v230_v62  ;;  %568 = vmatpush.msrb.mxu1 %v247_v63  ;;  %v682_v62 = vld [vmem:[%s2941_s3 + $0x210] sm:$0xff]  ;;  %v683_v63 = vld [vmem:[%s2941_s3 + $0x218] sm:$0xff] }
  0x83   :  { %589 = vmatpush.msrb.mxu2 %v262_v0  ;;  %608 = vmatpush.msrb.mxu3 %v279_v1  ;;  %v664_v0 = vld [vmem:[%s2941_s3 + $0x180] sm:$0xff]  ;;  %v665_v1 = vld [vmem:[%s2941_s3 + $0x188] sm:$0xff] }
  0x84   :  { %550 = vmatpush.msrb.mxu0 %v229_v2  ;;  %569 = vmatpush.msrb.mxu1 %v246_v3  ;;  %v666_v2 = vld [vmem:[%s2941_s3 + $0x190] sm:$0xff]  ;;  %v667_v3 = vld [vmem:[%s2941_s3 + $0x198] sm:$0xff] }
  0x85   :  { %590 = vmatpush.msrb.mxu2 %v261_v4  ;;  %609 = vmatpush.msrb.mxu3 %v278_v5  ;;  %v648_v4 = vld [vmem:[%s2941_s3 + $0x100] sm:$0xff]  ;;  %v649_v5 = vld [vmem:[%s2941_s3 + $0x108] sm:$0xff] }
  0x86   :  { %551 = vmatpush.msrb.mxu0 %v228_v6  ;;  %570 = vmatpush.msrb.mxu1 %v245_v7  ;;  %v650_v6 = vld [vmem:[%s2941_s3 + $0x110] sm:$0xff]  ;;  %v651_v7 = vld [vmem:[%s2941_s3 + $0x118] sm:$0xff] }
  0x87   :  { %591 = vmatpush.msrb.mxu2 %v260_v8  ;;  %610 = vmatpush.msrb.mxu3 %v277_v9  ;;  %v632_v8 = vld [vmem:[%s2941_s3 + $0x80] sm:$0xff]  ;;  %v633_v9 = vld [vmem:[%s2941_s3 + $0x88] sm:$0xff] }
  0x88   :  { %552 = vmatmul.f32.vlgmr.msrb.gmra.mxu0 %v32_v10  ;;  %592 = vmatmul.f32.vlgmr.msrb.gmra.mxu2 %v34_v11  ;;  %v634_v10 = vld [vmem:[%s2941_s3 + $0x90] sm:$0xff]  ;;  %v635_v11 = vld [vmem:[%s2941_s3 + $0x98] sm:$0xff] }
  0x89   :  { %571 = vmatpush.msrb.mxu1 %v244_v12  ;;  %611 = vmatpush.msrb.mxu3 %v276_v13  ;;  %v616_v12 = vld [vmem:[%s2941_s3] sm:$0xff]  ;;  %v617_v13 = vld [vmem:[%s2941_s3 + $0x8] sm:$0xff] }
  0x8a   :  { %572 = vmatmul.f32.vlgmr.msrb.gmra.mxu1 %v33_v14  ;;  %612 = vmatmul.f32.vlgmr.msrb.gmra.mxu3 %v35_v15  ;;  %v618_v14 = vld [vmem:[%s2941_s3 + $0x10] sm:$0xff]  ;;  %v619_v15 = vld [vmem:[%s2941_s3 + $0x18] sm:$0xff] }
  0x8b   :  { %908 = vmatpush.msra.mxu0 %v856_v16  ;;  %928 = vmatpush.msra.mxu1 %v857_v17  ;;  %v860_v16 = vld [vmem:[%s2941_s3 + $0x7a0] sm:$0xff]  ;;  %v861_v17 = vld [vmem:[%s2941_s3 + $0x7a8] sm:$0xff] }
  0x8c   :  { %948 = vmatpush.msra.mxu2 %v858_v18  ;;  %968 = vmatpush.msra.mxu3 %v859_v19  ;;  %v862_v18 = vld [vmem:[%s2941_s3 + $0x7b0] sm:$0xff]  ;;  %v863_v19 = vld [vmem:[%s2941_s3 + $0x7b8] sm:$0xff] }
  0x8d   :  { %909 = vmatpush.msra.mxu0 %v840_v20  ;;  %929 = vmatpush.msra.mxu1 %v841_v21  ;;  %v844_v20 = vld [vmem:[%s2941_s3 + $0x720] sm:$0xff]  ;;  %v845_v21 = vld [vmem:[%s2941_s3 + $0x728] sm:$0xff] }
  0x8e   :  { %949 = vmatpush.msra.mxu2 %v842_v22  ;;  %969 = vmatpush.msra.mxu3 %v843_v23  ;;  %v846_v22 = vld [vmem:[%s2941_s3 + $0x730] sm:$0xff]  ;;  %v847_v23 = vld [vmem:[%s2941_s3 + $0x738] sm:$0xff] }
  0x8f   :  { %910 = vmatpush.msra.mxu0 %v824_v24  ;;  %930 = vmatpush.msra.mxu1 %v825_v25  ;;  %v828_v24 = vld [vmem:[%s2941_s3 + $0x6a0] sm:$0xff]  ;;  %v829_v25 = vld [vmem:[%s2941_s3 + $0x6a8] sm:$0xff] }
  0x90   :  { %950 = vmatpush.msra.mxu2 %v826_v26  ;;  %970 = vmatpush.msra.mxu3 %v827_v27  ;;  %v830_v26 = vld [vmem:[%s2941_s3 + $0x6b0] sm:$0xff]  ;;  %v831_v27 = vld [vmem:[%s2941_s3 + $0x6b8] sm:$0xff] }
  0x91   :  { %911 = vmatpush.msra.mxu0 %v808_v28  ;;  %931 = vmatpush.msra.mxu1 %v809_v29  ;;  %v812_v28 = vld [vmem:[%s2941_s3 + $0x620] sm:$0xff]  ;;  %v813_v29 = vld [vmem:[%s2941_s3 + $0x628] sm:$0xff] }
  0x92   :  { %951 = vmatpush.msra.mxu2 %v810_v30  ;;  %971 = vmatpush.msra.mxu3 %v811_v31  ;;  %v814_v30 = vld [vmem:[%s2941_s3 + $0x630] sm:$0xff]  ;;  %v815_v31 = vld [vmem:[%s2941_s3 + $0x638] sm:$0xff] }
  0x93   :  { %912 = vmatpush.msra.mxu0 %v792_v32  ;;  %932 = vmatpush.msra.mxu1 %v793_v33  ;;  %v796_v32 = vld [vmem:[%s2941_s3 + $0x5a0] sm:$0xff]  ;;  %v797_v33 = vld [vmem:[%s2941_s3 + $0x5a8] sm:$0xff] }
  0x94   :  { %952 = vmatpush.msra.mxu2 %v794_v34  ;;  %972 = vmatpush.msra.mxu3 %v795_v35  ;;  %v1248_v34 = vld [vmem:[%s2940_s2] ss:$0 sm:$0xff]  ;;  %v798_v35 = vld [vmem:[%s2941_s3 + $0x5b0] sm:$0xff] }
  0x95   :  { %913 = vmatpush.msra.mxu0 %v776_v36  ;;  %933 = vmatpush.msra.mxu1 %v777_v37  ;;  %v799_v36 = vld [vmem:[%s2941_s3 + $0x5b8] sm:$0xff] }
  0x96   :  { %953 = vmatpush.msra.mxu2 %v778_v38  ;;  %973 = vmatpush.msra.mxu3 %v779_v39  ;;  %v780_v38 = vld [vmem:[%s2941_s3 + $0x520] sm:$0xff]  ;;  %v781_v39 = vld [vmem:[%s2941_s3 + $0x528] sm:$0xff] }
  0x97   :  { %914 = vmatpush.msra.mxu0 %v760_v40  ;;  %934 = vmatpush.msra.mxu1 %v761_v41  ;;  %v782_v40 = vld [vmem:[%s2941_s3 + $0x530] sm:$0xff]  ;;  %v783_v41 = vld [vmem:[%s2941_s3 + $0x538] sm:$0xff] }
  0x98   :  { %954 = vmatpush.msra.mxu2 %v762_v42  ;;  %974 = vmatpush.msra.mxu3 %v763_v43  ;;  %v764_v42 = vld [vmem:[%s2941_s3 + $0x4a0] sm:$0xff]  ;;  %v765_v43 = vld [vmem:[%s2941_s3 + $0x4a8] sm:$0xff] }
  0x99   :  { %915 = vmatpush.msra.mxu0 %v744_v44  ;;  %935 = vmatpush.msra.mxu1 %v745_v45  ;;  %v766_v45 = vld [vmem:[%s2941_s3 + $0x4b0] sm:$0xff] }
  0x9a   :  { %955 = vmatpush.msra.mxu2 %v746_v46  ;;  %975 = vmatpush.msra.mxu3 %v747_v47  ;;  %v767_v46 = vld [vmem:[%s2941_s3 + $0x4b8] sm:$0xff] }
  0x9b   :  { %916 = vmatpush.msra.mxu0 %v728_v48  ;;  %936 = vmatpush.msra.mxu1 %v729_v49  ;;  %v748_v48 = vld [vmem:[%s2941_s3 + $0x420] sm:$0xff]  ;;  %v749_v49 = vld [vmem:[%s2941_s3 + $0x428] sm:$0xff] }
  0x9c   :  { %956 = vmatpush.msra.mxu2 %v730_v50  ;;  %976 = vmatpush.msra.mxu3 %v731_v51  ;;  %v750_v50 = vld [vmem:[%s2941_s3 + $0x430] sm:$0xff]  ;;  %v751_v51 = vld [vmem:[%s2941_s3 + $0x438] sm:$0xff] }
  0x9d   :  { %917 = vmatpush.msra.mxu0 %v712_v52  ;;  %937 = vmatpush.msra.mxu1 %v713_v53  ;;  %v732_v52 = vld [vmem:[%s2941_s3 + $0x3a0] sm:$0xff]  ;;  %v733_v53 = vld [vmem:[%s2941_s3 + $0x3a8] sm:$0xff] }
  0x9e   :  { %957 = vmatpush.msra.mxu2 %v714_v54  ;;  %977 = vmatpush.msra.mxu3 %v715_v55  ;;  %v734_v55 = vld [vmem:[%s2941_s3 + $0x3b0] sm:$0xff] }
  0x9f   :  { %918 = vmatpush.msra.mxu0 %v696_v56  ;;  %938 = vmatpush.msra.mxu1 %v697_v57  ;;  %v735_v56 = vld [vmem:[%s2941_s3 + $0x3b8] sm:$0xff] }
  0xa0   :  { %958 = vmatpush.msra.mxu2 %v698_v58  ;;  %978 = vmatpush.msra.mxu3 %v699_v59  ;;  %v716_v58 = vld [vmem:[%s2941_s3 + $0x320] sm:$0xff]  ;;  %v717_v59 = vld [vmem:[%s2941_s3 + $0x328] sm:$0xff] }
  0xa1   :  { %919 = vmatpush.msra.mxu0 %v680_v60  ;;  %939 = vmatpush.msra.mxu1 %v681_v61  ;;  %v718_v60 = vld [vmem:[%s2941_s3 + $0x330] sm:$0xff]  ;;  %v719_v61 = vld [vmem:[%s2941_s3 + $0x338] sm:$0xff] }
  0xa2   :  { %959 = vmatpush.msra.mxu2 %v682_v62  ;;  %979 = vmatpush.msra.mxu3 %v683_v63  ;;  %v700_v63 = vld [vmem:[%s2941_s3 + $0x2a0] sm:$0xff] }
  0xa3   :  { %920 = vmatpush.msra.mxu0 %v664_v0  ;;  %940 = vmatpush.msra.mxu1 %v665_v1  ;;  %v701_v0 = vld [vmem:[%s2941_s3 + $0x2a8] sm:$0xff]  ;;  %v702_v1 = vld [vmem:[%s2941_s3 + $0x2b0] sm:$0xff] }
  0xa4   :  { %960 = vmatpush.msra.mxu2 %v666_v2  ;;  %980 = vmatpush.msra.mxu3 %v667_v3  ;;  %v703_v3 = vld [vmem:[%s2941_s3 + $0x2b8] sm:$0xff] }
  0xa5   :  { %921 = vmatpush.msra.mxu0 %v648_v4  ;;  %941 = vmatpush.msra.mxu1 %v649_v5  ;;  %v684_v4 = vld [vmem:[%s2941_s3 + $0x220] sm:$0xff]  ;;  %v685_v5 = vld [vmem:[%s2941_s3 + $0x228] sm:$0xff] }
  0xa6   :  { %961 = vmatpush.msra.mxu2 %v650_v6  ;;  %981 = vmatpush.msra.mxu3 %v651_v7  ;;  %v686_v6 = vld [vmem:[%s2941_s3 + $0x230] sm:$0xff]  ;;  %v687_v7 = vld [vmem:[%s2941_s3 + $0x238] sm:$0xff] }
  0xa7   :  { %922 = vmatpush.msra.mxu0 %v632_v8  ;;  %942 = vmatpush.msra.mxu1 %v633_v9  ;;  %v668_v9 = vld [vmem:[%s2941_s3 + $0x1a0] sm:$0xff] }
  0xa8   :  { %962 = vmatpush.msra.mxu2 %v634_v10  ;;  %982 = vmatpush.msra.mxu3 %v635_v11  ;;  %v669_v10 = vld [vmem:[%s2941_s3 + $0x1a8] sm:$0xff]  ;;  %v670_v11 = vld [vmem:[%s2941_s3 + $0x1b0] sm:$0xff] }
  0xa9   :  { %923 = vmatpush.msra.mxu0 %v616_v12  ;;  %943 = vmatpush.msra.mxu1 %v617_v13  ;;  %v671_v13 = vld [vmem:[%s2941_s3 + $0x1b8] sm:$0xff] }
  0xaa   :  { %963 = vmatpush.msra.mxu2 %v618_v14  ;;  %983 = vmatpush.msra.mxu3 %v619_v15  ;;  %v652_v14 = vld [vmem:[%s2941_s3 + $0x120] sm:$0xff]  ;;  %v653_v15 = vld [vmem:[%s2941_s3 + $0x128] sm:$0xff] }
  0xab   :  { %988 = vmatpush.msrb.mxu0 %v860_v16  ;;  %1008 = vmatpush.msrb.mxu1 %v861_v17  ;;  %v654_v16 = vld [vmem:[%s2941_s3 + $0x130] sm:$0xff]  ;;  %v655_v17 = vld [vmem:[%s2941_s3 + $0x138] sm:$0xff] }
  0xac   :  { %1028 = vmatpush.msrb.mxu2 %v862_v18  ;;  %1048 = vmatpush.msrb.mxu3 %v863_v19  ;;  %v636_v19 = vld [vmem:[%s2941_s3 + $0xa0] sm:$0xff] }
  0xad   :  { %989 = vmatpush.msrb.mxu0 %v844_v20  ;;  %1009 = vmatpush.msrb.mxu1 %v845_v21  ;;  %v637_v20 = vld [vmem:[%s2941_s3 + $0xa8] sm:$0xff]  ;;  %v638_v21 = vld [vmem:[%s2941_s3 + $0xb0] sm:$0xff] }
  0xae   :  { %1029 = vmatpush.msrb.mxu2 %v846_v22  ;;  %1049 = vmatpush.msrb.mxu3 %v847_v23  ;;  %v639_v23 = vld [vmem:[%s2941_s3 + $0xb8] sm:$0xff] }
  0xaf   :  { %990 = vmatpush.msrb.mxu0 %v828_v24  ;;  %1010 = vmatpush.msrb.mxu1 %v829_v25  ;;  %v620_v24 = vld [vmem:[%s2941_s3 + $0x20] sm:$0xff]  ;;  %v621_v25 = vld [vmem:[%s2941_s3 + $0x28] sm:$0xff] }
  0xb0   :  { %1030 = vmatpush.msrb.mxu2 %v830_v26  ;;  %1050 = vmatpush.msrb.mxu3 %v831_v27  ;;  %v622_v26 = vld [vmem:[%s2941_s3 + $0x30] sm:$0xff]  ;;  %v623_v27 = vld [vmem:[%s2941_s3 + $0x38] sm:$0xff] }
  0xb1   :  { %991 = vmatpush.msrb.mxu0 %v812_v28  ;;  %1011 = vmatpush.msrb.mxu1 %v813_v29 }
  0xb2   :  { %1031 = vmatpush.msrb.mxu2 %v814_v30  ;;  %1051 = vmatpush.msrb.mxu3 %v815_v31 }
  0xb3   :  { %992 = vmatpush.msrb.mxu0 %v796_v32  ;;  %1012 = vmatpush.msrb.mxu1 %v797_v33 }
  0xb4   :  { %1032 = vmatpush.msrb.mxu2 %v798_v35  ;;  %1052 = vmatpush.msrb.mxu3 %v799_v36 }
  0xb5   :  { %993 = vmatpush.msrb.mxu0 %v780_v38  ;;  %1013 = vmatpush.msrb.mxu1 %v781_v39 }
  0xb6   :  { %1033 = vmatpush.msrb.mxu2 %v782_v40  ;;  %1053 = vmatpush.msrb.mxu3 %v783_v41 }
  0xb7   :  { %994 = vmatpush.msrb.mxu0 %v764_v42  ;;  %1014 = vmatpush.msrb.mxu1 %v765_v43 }
  0xb8   :  { %1034 = vmatpush.msrb.mxu2 %v766_v45  ;;  %1054 = vmatpush.msrb.mxu3 %v767_v46 }
  0xb9   :  { %995 = vmatpush.msrb.mxu0 %v748_v48  ;;  %1015 = vmatpush.msrb.mxu1 %v749_v49  ;;  %v864_v49 = vld [vmem:[%s2941_s3 + $0x7c0] sm:$0xff] }
  0xba   :  { %1035 = vmatpush.msrb.mxu2 %v750_v50  ;;  %1055 = vmatpush.msrb.mxu3 %v751_v51  ;;  %v865_v50 = vld [vmem:[%s2941_s3 + $0x7c8] sm:$0xff]  ;;  %v866_v51 = vld [vmem:[%s2941_s3 + $0x7d0] sm:$0xff] }
  0xbb   :  { %996 = vmatpush.msrb.mxu0 %v732_v52  ;;  %1016 = vmatpush.msrb.mxu1 %v733_v53  ;;  %v867_v52 = vld [vmem:[%s2941_s3 + $0x7d8] sm:$0xff]  ;;  %v848_v53 = vld [vmem:[%s2941_s3 + $0x740] sm:$0xff] }
  0xbc   :  { %1036 = vmatpush.msrb.mxu2 %v734_v55  ;;  %1056 = vmatpush.msrb.mxu3 %v735_v56  ;;  %v850_v55 = vld [vmem:[%s2941_s3 + $0x750] sm:$0xff]  ;;  %v851_v56 = vld [vmem:[%s2941_s3 + $0x758] sm:$0xff] }
  0xbd   :  { %997 = vmatpush.msrb.mxu0 %v716_v58  ;;  %1017 = vmatpush.msrb.mxu1 %v717_v59  ;;  %v833_v58 = vld [vmem:[%s2941_s3 + $0x6c8] sm:$0xff]  ;;  %v834_v59 = vld [vmem:[%s2941_s3 + $0x6d0] sm:$0xff] }
  0xbe   :  { %1037 = vmatpush.msrb.mxu2 %v718_v60  ;;  %1057 = vmatpush.msrb.mxu3 %v719_v61  ;;  %v835_v60 = vld [vmem:[%s2941_s3 + $0x6d8] sm:$0xff]  ;;  %v816_v61 = vld [vmem:[%s2941_s3 + $0x640] sm:$0xff] }
  0xbf   :  { %v313_v37 = vpop.f32.mrf.mxu0  ;;  %998 = vmatpush.msrb.mxu0 %v700_v63  ;;  %1018 = vmatpush.msrb.mxu1 %v701_v0  ;;  %v818_v63 = vld [vmem:[%s2941_s3 + $0x650] sm:$0xff]  ;;  %v819_v0 = vld [vmem:[%s2941_s3 + $0x658] sm:$0xff] }
  0xc0   :  { %v314_v44 = vadd.f32 %v1248_v34, %v313_v37  ;;  %1038 = vmatpush.msrb.mxu2 %v702_v1  ;;  %1058 = vmatpush.msrb.mxu3 %v703_v3  ;;  %v800_v1 = vld [vmem:[%s2941_s3 + $0x5c0] sm:$0xff]  ;;  %v802_v3 = vld [vmem:[%s2941_s3 + $0x5d0] sm:$0xff] }
  0xc1   :  { %999 = vmatpush.msrb.mxu0 %v684_v4  ;;  %1019 = vmatpush.msrb.mxu1 %v685_v5  ;;  %v803_v4 = vld [vmem:[%s2941_s3 + $0x5d8] sm:$0xff]  ;;  %v784_v5 = vld [vmem:[%s2941_s3 + $0x540] sm:$0xff] }
  0xc2   :  { %v333_v47 = vpop.f32.mrf.mxu1  ;;  %1039 = vmatpush.msrb.mxu2 %v686_v6  ;;  %1059 = vmatpush.msrb.mxu3 %v687_v7  ;;  %v785_v6 = vld [vmem:[%s2941_s3 + $0x548] sm:$0xff]  ;;  %v786_v7 = vld [vmem:[%s2941_s3 + $0x550] sm:$0xff] }
  0xc3   :  { %v334_v54 = vadd.f32 %v333_v47, %v314_v44  ;;  %1000 = vmatpush.msrb.mxu0 %v668_v9  ;;  %1020 = vmatpush.msrb.mxu1 %v669_v10  ;;  %v768_v9 = vld [vmem:[%s2941_s3 + $0x4c0] sm:$0xff]  ;;  %v769_v10 = vld [vmem:[%s2941_s3 + $0x4c8] sm:$0xff] }
  0xc4   :  { %1040 = vmatpush.msrb.mxu2 %v670_v11  ;;  %1060 = vmatpush.msrb.mxu3 %v671_v13  ;;  %v770_v11 = vld [vmem:[%s2941_s3 + $0x4d0] sm:$0xff]  ;;  %v752_v13 = vld [vmem:[%s2941_s3 + $0x440] sm:$0xff] }
  0xc5   :  { %v353_v57 = vpop.f32.mrf.mxu2  ;;  %1001 = vmatpush.msrb.mxu0 %v652_v14  ;;  %1021 = vmatpush.msrb.mxu1 %v653_v15  ;;  %v753_v14 = vld [vmem:[%s2941_s3 + $0x448] sm:$0xff]  ;;  %v754_v15 = vld [vmem:[%s2941_s3 + $0x450] sm:$0xff] }
  0xc6   :  { %v354_v62 = vadd.f32 %v353_v57, %v334_v54  ;;  %1041 = vmatpush.msrb.mxu2 %v654_v16  ;;  %1061 = vmatpush.msrb.mxu3 %v655_v17  ;;  %v849_v54 = vld [vmem:[%s2941_s3 + $0x748] sm:$0xff]  ;;  %v832_v57 = vld [vmem:[%s2941_s3 + $0x6c0] sm:$0xff]  ;;  %v755_v16 = vld [vmem:[%s2941_s3 + $0x458] sm:$0xff] }
  0xc7   :  { %1002 = vmatpush.msrb.mxu0 %v636_v19  ;;  %1022 = vmatpush.msrb.mxu1 %v637_v20  ;;  %v736_v17 = vld [vmem:[%s2941_s3 + $0x3c0] sm:$0xff]  ;;  %v738_v19 = vld [vmem:[%s2941_s3 + $0x3d0] sm:$0xff]  ;;  %v739_v20 = vld [vmem:[%s2941_s3 + $0x3d8] sm:$0xff] }
  0xc8   :  { %v373_v2 = vpop.f32.mrf.mxu3  ;;  %1042 = vmatpush.msrb.mxu2 %v638_v21  ;;  %1062 = vmatpush.msrb.mxu3 %v639_v23  ;;  %v720_v21 = vld [vmem:[%s2941_s3 + $0x340] sm:$0xff]  ;;  %v722_v23 = vld [vmem:[%s2941_s3 + $0x350] sm:$0xff] }
  0xc9   :  { %v374_v8 = vadd.f32 %v373_v2, %v354_v62  ;;  %1003 = vmatpush.msrb.mxu0 %v620_v24  ;;  %1023 = vmatpush.msrb.mxu1 %v621_v25  ;;  %v817_v62 = vld [vmem:[%s2941_s3 + $0x648] sm:$0xff]  ;;  %v723_v24 = vld [vmem:[%s2941_s3 + $0x358] sm:$0xff]  ;;  %v704_v25 = vld [vmem:[%s2941_s3 + $0x2c0] sm:$0xff] }
  0xca   :  { %1043 = vmatpush.msrb.mxu2 %v622_v26  ;;  %1063 = vmatpush.msrb.mxu3 %v623_v27  ;;  %v801_v2 = vld [vmem:[%s2941_s3 + $0x5c8] sm:$0xff]  ;;  %v706_v27 = vld [vmem:[%s2941_s3 + $0x2d0] sm:$0xff] }
  0xcb   :  { %v393_v12 = vpop.f32.mrf.mxu0  ;;  %v705_v26 = vld [vmem:[%s2941_s3 + $0x2c8] sm:$0xff] }
  0xcc   :  { %v394_v18 = vadd.f32 %v393_v12, %v374_v8  ;;  %v787_v8 = vld [vmem:[%s2941_s3 + $0x558] sm:$0xff] }
  0xcd   :  { %v771_v12 = vld [vmem:[%s2941_s3 + $0x4d8] sm:$0xff] }
  0xce   :  { %v413_v22 = vpop.f32.mrf.mxu1 }
  0xcf   :  { %v414_v28 = vadd.f32 %v413_v22, %v394_v18  ;;  %v433_v29 = vpop.f32.mrf.mxu2  ;;  %v737_v18 = vld [vmem:[%s2941_s3 + $0x3c8] sm:$0xff] }
  0xd0   :  { %v721_v22 = vld [vmem:[%s2941_s3 + $0x348] sm:$0xff] }
  0xd1   :  { %v434_v30 = vadd.f32 %v433_v29, %v414_v28  ;;  %v707_v28 = vld [vmem:[%s2941_s3 + $0x2d8] sm:$0xff]  ;;  %v688_v29 = vld [vmem:[%s2941_s3 + $0x240] sm:$0xff] }
  0xd2   :  { %v453_v31 = vpop.f32.mrf.mxu3 }
  0xd3   :  { %v454_v33 = vadd.f32 %v453_v31, %v434_v30  ;;  %v689_v30 = vld [vmem:[%s2941_s3 + $0x248] sm:$0xff]  ;;  %v690_v31 = vld [vmem:[%s2941_s3 + $0x250] sm:$0xff] }
  0xe3   :  { %v473_v32 = vpop.f32.mrf.mxu0 }
  0xe4   :  { %v474_v34 = vadd.f32 %v473_v32, %v454_v33  ;;  %v691_v32 = vld [vmem:[%s2941_s3 + $0x258] sm:$0xff]  ;;  %v672_v33 = vld [vmem:[%s2941_s3 + $0x1c0] sm:$0xff] }
  0xe6   :  { %v493_v35 = vpop.f32.mrf.mxu1 }
  0xe7   :  { %v494_v37 = vadd.f32 %v493_v35, %v474_v34  ;;  %v673_v34 = vld [vmem:[%s2941_s3 + $0x1c8] sm:$0xff]  ;;  %v674_v35 = vld [vmem:[%s2941_s3 + $0x1d0] sm:$0xff] }
  0xe9   :  { %v513_v36 = vpop.f32.mrf.mxu2 }
  0xea   :  { %v514_v38 = vadd.f32 %v513_v36, %v494_v37  ;;  %v675_v36 = vld [vmem:[%s2941_s3 + $0x1d8] sm:$0xff]  ;;  %v656_v37 = vld [vmem:[%s2941_s3 + $0x140] sm:$0xff] }
  0xec   :  { %v533_v39 = vpop.f32.mrf.mxu3 }
  0xed   :  { %v534_v40 = vadd.f32 %v533_v39, %v514_v38  ;;  %v657_v38 = vld [vmem:[%s2941_s3 + $0x148] sm:$0xff]  ;;  %v658_v39 = vld [vmem:[%s2941_s3 + $0x150] sm:$0xff] }
 0x105   :  { %v553_v41 = vpop.f32.mrf.mxu0 }
 0x106   :  { %v554_v42 = vadd.f32 %v553_v41, %v534_v40  ;;  %v659_v40 = vld [vmem:[%s2941_s3 + $0x158] sm:$0xff]  ;;  %v640_v41 = vld [vmem:[%s2941_s3 + $0xc0] sm:$0xff] }
 0x107   :  { %v573_v43 = vpop.f32.mrf.mxu1 }
 0x108   :  { %v574_v44 = vadd.f32 %v573_v43, %v554_v42  ;;  %v641_v42 = vld [vmem:[%s2941_s3 + $0xc8] sm:$0xff]  ;;  %v642_v43 = vld [vmem:[%s2941_s3 + $0xd0] sm:$0xff] }
 0x10b   :  { %v593_v45 = vpop.f32.mrf.mxu2 }
 0x10c   :  { %v594_v46 = vadd.f32 %v593_v45, %v574_v44  ;;  %v643_v44 = vld [vmem:[%s2941_s3 + $0xd8] sm:$0xff]  ;;  %v624_v45 = vld [vmem:[%s2941_s3 + $0x40] sm:$0xff] }
 0x10d   :  { %v613_v47 = vpop.f32.mrf.mxu3 }
 0x10e   :  { %v2482_v48 = vadd.f32 %v613_v47, %v594_v46  ;;  %v625_v46 = vld [vmem:[%s2941_s3 + $0x48] sm:$0xff]  ;;  %v626_v47 = vld [vmem:[%s2941_s3 + $0x50] sm:$0xff] }
 0x110   :  { %924 = vmatmul.f32.vlgmr.msra.gmra.mxu0 %v2482_v48  ;;  %944 = vmatmul.f32.vlgmr.msra.gmra.mxu1 %v2482_v48 }
 0x111   :  { %964 = vmatmul.f32.vlgmr.msra.gmra.mxu2 %v2482_v48  ;;  %984 = vmatmul.f32.vlgmr.msra.gmra.mxu3 %v2482_v48 }
 0x112   :  { %1068 = vmatpush.msra.mxu0 %v864_v49  ;;  %1088 = vmatpush.msra.mxu1 %v865_v50  ;;  %v627_v49 = vld [vmem:[%s2941_s3 + $0x58] sm:$0xff]  ;;  %v868_v50 = vld [vmem:[%s2941_s3 + $0x7e0] sm:$0xff] }
 0x113   :  { %1108 = vmatpush.msra.mxu2 %v866_v51  ;;  %1128 = vmatpush.msra.mxu3 %v867_v52  ;;  %v869_v51 = vld [vmem:[%s2941_s3 + $0x7e8] sm:$0xff]  ;;  %v870_v52 = vld [vmem:[%s2941_s3 + $0x7f0] sm:$0xff] }
 0x114   :  { %1069 = vmatpush.msra.mxu0 %v848_v53  ;;  %1089 = vmatpush.msra.mxu1 %v849_v54  ;;  %v871_v53 = vld [vmem:[%s2941_s3 + $0x7f8] sm:$0xff]  ;;  %v852_v54 = vld [vmem:[%s2941_s3 + $0x760] sm:$0xff] }
 0x115   :  { %1109 = vmatpush.msra.mxu2 %v850_v55  ;;  %1129 = vmatpush.msra.mxu3 %v851_v56  ;;  %v853_v55 = vld [vmem:[%s2941_s3 + $0x768] sm:$0xff]  ;;  %v854_v56 = vld [vmem:[%s2941_s3 + $0x770] sm:$0xff] }
 0x116   :  { %1070 = vmatpush.msra.mxu0 %v832_v57  ;;  %1090 = vmatpush.msra.mxu1 %v833_v58  ;;  %v855_v57 = vld [vmem:[%s2941_s3 + $0x778] sm:$0xff]  ;;  %v836_v58 = vld [vmem:[%s2941_s3 + $0x6e0] sm:$0xff] }
 0x117   :  { %1110 = vmatpush.msra.mxu2 %v834_v59  ;;  %1130 = vmatpush.msra.mxu3 %v835_v60  ;;  %v837_v59 = vld [vmem:[%s2941_s3 + $0x6e8] sm:$0xff]  ;;  %v838_v60 = vld [vmem:[%s2941_s3 + $0x6f0] sm:$0xff] }
 0x118   :  { %1071 = vmatpush.msra.mxu0 %v816_v61  ;;  %1091 = vmatpush.msra.mxu1 %v817_v62  ;;  %v839_v61 = vld [vmem:[%s2941_s3 + $0x6f8] sm:$0xff]  ;;  %v820_v62 = vld [vmem:[%s2941_s3 + $0x660] sm:$0xff] }
 0x119   :  { %1111 = vmatpush.msra.mxu2 %v818_v63  ;;  %1131 = vmatpush.msra.mxu3 %v819_v0  ;;  %v821_v63 = vld [vmem:[%s2941_s3 + $0x668] sm:$0xff]  ;;  %v822_v0 = vld [vmem:[%s2941_s3 + $0x670] sm:$0xff] }
 0x11a   :  { %1004 = vmatmul.f32.vlgmr.msrb.gmra.mxu0 %v2482_v48  ;;  %1024 = vmatmul.f32.vlgmr.msrb.gmra.mxu1 %v2482_v48 }
 0x11b   :  { %1044 = vmatmul.f32.vlgmr.msrb.gmra.mxu2 %v2482_v48  ;;  %1064 = vmatmul.f32.vlgmr.msrb.gmra.mxu3 %v2482_v48 }
 0x11c   :  { %1072 = vmatpush.msra.mxu0 %v800_v1  ;;  %1092 = vmatpush.msra.mxu1 %v801_v2  ;;  %v823_v1 = vld [vmem:[%s2941_s3 + $0x678] sm:$0xff]  ;;  %v804_v2 = vld [vmem:[%s2941_s3 + $0x5e0] sm:$0xff] }
 0x11d   :  { %1112 = vmatpush.msra.mxu2 %v802_v3  ;;  %1132 = vmatpush.msra.mxu3 %v803_v4  ;;  %v805_v3 = vld [vmem:[%s2941_s3 + $0x5e8] sm:$0xff]  ;;  %v806_v4 = vld [vmem:[%s2941_s3 + $0x5f0] sm:$0xff] }
 0x11e   :  { %1073 = vmatpush.msra.mxu0 %v784_v5  ;;  %1093 = vmatpush.msra.mxu1 %v785_v6  ;;  %v807_v5 = vld [vmem:[%s2941_s3 + $0x5f8] sm:$0xff]  ;;  %v788_v6 = vld [vmem:[%s2941_s3 + $0x560] sm:$0xff] }
 0x11f   :  { %1113 = vmatpush.msra.mxu2 %v786_v7  ;;  %1133 = vmatpush.msra.mxu3 %v787_v8  ;;  %v789_v7 = vld [vmem:[%s2941_s3 + $0x568] sm:$0xff]  ;;  %v790_v8 = vld [vmem:[%s2941_s3 + $0x570] sm:$0xff] }
 0x120   :  { %1074 = vmatpush.msra.mxu0 %v768_v9  ;;  %1094 = vmatpush.msra.mxu1 %v769_v10  ;;  %v791_v9 = vld [vmem:[%s2941_s3 + $0x578] sm:$0xff]  ;;  %v772_v10 = vld [vmem:[%s2941_s3 + $0x4e0] sm:$0xff] }
 0x121   :  { %1114 = vmatpush.msra.mxu2 %v770_v11  ;;  %1134 = vmatpush.msra.mxu3 %v771_v12  ;;  %v773_v11 = vld [vmem:[%s2941_s3 + $0x4e8] sm:$0xff]  ;;  %v774_v12 = vld [vmem:[%s2941_s3 + $0x4f0] sm:$0xff] }
 0x122   :  { %1075 = vmatpush.msra.mxu0 %v752_v13  ;;  %1095 = vmatpush.msra.mxu1 %v753_v14  ;;  %v775_v13 = vld [vmem:[%s2941_s3 + $0x4f8] sm:$0xff]  ;;  %v756_v14 = vld [vmem:[%s2941_s3 + $0x460] sm:$0xff] }
 0x123   :  { %1115 = vmatpush.msra.mxu2 %v754_v15  ;;  %1135 = vmatpush.msra.mxu3 %v755_v16  ;;  %v757_v15 = vld [vmem:[%s2941_s3 + $0x468] sm:$0xff]  ;;  %v758_v16 = vld [vmem:[%s2941_s3 + $0x470] sm:$0xff] }
 0x124   :  { %1076 = vmatpush.msra.mxu0 %v736_v17  ;;  %1096 = vmatpush.msra.mxu1 %v737_v18  ;;  %v759_v17 = vld [vmem:[%s2941_s3 + $0x478] sm:$0xff]  ;;  %v740_v18 = vld [vmem:[%s2941_s3 + $0x3e0] sm:$0xff] }
 0x125   :  { %1116 = vmatpush.msra.mxu2 %v738_v19  ;;  %1136 = vmatpush.msra.mxu3 %v739_v20  ;;  %v741_v19 = vld [vmem:[%s2941_s3 + $0x3e8] sm:$0xff]  ;;  %v742_v20 = vld [vmem:[%s2941_s3 + $0x3f0] sm:$0xff] }
 0x126   :  { %1077 = vmatpush.msra.mxu0 %v720_v21  ;;  %1097 = vmatpush.msra.mxu1 %v721_v22  ;;  %v743_v21 = vld [vmem:[%s2941_s3 + $0x3f8] sm:$0xff]  ;;  %v724_v22 = vld [vmem:[%s2941_s3 + $0x360] sm:$0xff] }
 0x127   :  { %1117 = vmatpush.msra.mxu2 %v722_v23  ;;  %1137 = vmatpush.msra.mxu3 %v723_v24  ;;  %v725_v23 = vld [vmem:[%s2941_s3 + $0x368] sm:$0xff]  ;;  %v726_v24 = vld [vmem:[%s2941_s3 + $0x370] sm:$0xff] }
 0x128   :  { %1078 = vmatpush.msra.mxu0 %v704_v25  ;;  %1098 = vmatpush.msra.mxu1 %v705_v26  ;;  %v727_v25 = vld [vmem:[%s2941_s3 + $0x378] sm:$0xff]  ;;  %v708_v26 = vld [vmem:[%s2941_s3 + $0x2e0] sm:$0xff] }
 0x129   :  { %1118 = vmatpush.msra.mxu2 %v706_v27  ;;  %1138 = vmatpush.msra.mxu3 %v707_v28  ;;  %v709_v27 = vld [vmem:[%s2941_s3 + $0x2e8] sm:$0xff]  ;;  %v710_v28 = vld [vmem:[%s2941_s3 + $0x2f0] sm:$0xff] }
 0x12a   :  { %1079 = vmatpush.msra.mxu0 %v688_v29  ;;  %1099 = vmatpush.msra.mxu1 %v689_v30  ;;  %v711_v29 = vld [vmem:[%s2941_s3 + $0x2f8] sm:$0xff]  ;;  %v692_v30 = vld [vmem:[%s2941_s3 + $0x260] sm:$0xff] }
 0x12b   :  { %1119 = vmatpush.msra.mxu2 %v690_v31  ;;  %1139 = vmatpush.msra.mxu3 %v691_v32  ;;  %v693_v31 = vld [vmem:[%s2941_s3 + $0x268] sm:$0xff]  ;;  %v694_v32 = vld [vmem:[%s2941_s3 + $0x270] sm:$0xff] }
 0x12c   :  { %1080 = vmatpush.msra.mxu0 %v672_v33  ;;  %1100 = vmatpush.msra.mxu1 %v673_v34  ;;  %v695_v33 = vld [vmem:[%s2941_s3 + $0x278] sm:$0xff]  ;;  %v676_v34 = vld [vmem:[%s2941_s3 + $0x1e0] sm:$0xff] }
 0x12d   :  { %1120 = vmatpush.msra.mxu2 %v674_v35  ;;  %1140 = vmatpush.msra.mxu3 %v675_v36  ;;  %v677_v35 = vld [vmem:[%s2941_s3 + $0x1e8] sm:$0xff]  ;;  %v678_v36 = vld [vmem:[%s2941_s3 + $0x1f0] sm:$0xff] }
 0x12e   :  { %1081 = vmatpush.msra.mxu0 %v656_v37  ;;  %1101 = vmatpush.msra.mxu1 %v657_v38  ;;  %v679_v37 = vld [vmem:[%s2941_s3 + $0x1f8] sm:$0xff]  ;;  %v660_v38 = vld [vmem:[%s2941_s3 + $0x160] sm:$0xff] }
 0x12f   :  { %1121 = vmatpush.msra.mxu2 %v658_v39  ;;  %1141 = vmatpush.msra.mxu3 %v659_v40  ;;  %v661_v39 = vld [vmem:[%s2941_s3 + $0x168] sm:$0xff]  ;;  %v662_v40 = vld [vmem:[%s2941_s3 + $0x170] sm:$0xff] }
 0x130   :  { %1082 = vmatpush.msra.mxu0 %v640_v41  ;;  %1102 = vmatpush.msra.mxu1 %v641_v42  ;;  %v663_v41 = vld [vmem:[%s2941_s3 + $0x178] sm:$0xff]  ;;  %v644_v42 = vld [vmem:[%s2941_s3 + $0xe0] sm:$0xff] }
 0x131   :  { %1122 = vmatpush.msra.mxu2 %v642_v43  ;;  %1142 = vmatpush.msra.mxu3 %v643_v44  ;;  %v645_v43 = vld [vmem:[%s2941_s3 + $0xe8] sm:$0xff]  ;;  %v646_v44 = vld [vmem:[%s2941_s3 + $0xf0] sm:$0xff] }
 0x132   :  { %1083 = vmatpush.msra.mxu0 %v624_v45  ;;  %1103 = vmatpush.msra.mxu1 %v625_v46  ;;  %v647_v45 = vld [vmem:[%s2941_s3 + $0xf8] sm:$0xff]  ;;  %v628_v46 = vld [vmem:[%s2941_s3 + $0x60] sm:$0xff] }
 0x133   :  { %1123 = vmatpush.msra.mxu2 %v626_v47  ;;  %1143 = vmatpush.msra.mxu3 %v627_v49  ;;  %v629_v47 = vld [vmem:[%s2941_s3 + $0x68] sm:$0xff]  ;;  %v630_v49 = vld [vmem:[%s2941_s3 + $0x70] sm:$0xff] }
 0x134   :  { %1084 = vmatmul.f32.vlgmr.msra.gmra.mxu0 %v2482_v48  ;;  %1104 = vmatmul.f32.vlgmr.msra.gmra.mxu1 %v2482_v48 }
 0x135   :  { %1124 = vmatmul.f32.vlgmr.msra.gmra.mxu2 %v2482_v48  ;;  %1144 = vmatmul.f32.vlgmr.msra.gmra.mxu3 %v2482_v48 }
 0x136   :  { %1148 = vmatpush.msrb.mxu0 %v868_v50  ;;  %1168 = vmatpush.msrb.mxu1 %v869_v51  ;;  %v631_v50 = vld [vmem:[%s2941_s3 + $0x78] sm:$0xff]  ;;  %v872_v51 = vld [vmem:[%s2942_s4] sm:$0xff] }
 0x137   :  { %1188 = vmatpush.msrb.mxu2 %v870_v52  ;;  %1208 = vmatpush.msrb.mxu3 %v871_v53  ;;  %v876_v52 = vperm.slane %v872_v51, 0  ;;  %v877_v53 = vperm.slane %v872_v51, 1 }
 0x138   :  { %1149 = vmatpush.msrb.mxu0 %v852_v54  ;;  %1169 = vmatpush.msrb.mxu1 %v853_v55 }
 0x139   :  { %1189 = vmatpush.msrb.mxu2 %v854_v56  ;;  %1209 = vmatpush.msrb.mxu3 %v855_v57 }
 0x13a   :  { %1150 = vmatpush.msrb.mxu0 %v836_v58  ;;  %1170 = vmatpush.msrb.mxu1 %v837_v59  ;;  %v878_v58 = vperm.slane %v872_v51, 2 }
 0x13b   :  { %1190 = vmatpush.msrb.mxu2 %v838_v60  ;;  %1210 = vmatpush.msrb.mxu3 %v839_v61  ;;  %v880_v61 = vperm.slane %v872_v51, 4 }
 0x13c   :  { %1151 = vmatpush.msrb.mxu0 %v820_v62  ;;  %1171 = vmatpush.msrb.mxu1 %v821_v63  ;;  %v881_v62 = vperm.slane %v872_v51, 5 }
 0x13d   :  { %1191 = vmatpush.msrb.mxu2 %v822_v0  ;;  %1211 = vmatpush.msrb.mxu3 %v823_v1 }
 0x13e   :  { %1152 = vmatpush.msrb.mxu0 %v804_v2  ;;  %1172 = vmatpush.msrb.mxu1 %v805_v3 }
 0x13f   :  { %1192 = vmatpush.msrb.mxu2 %v806_v4  ;;  %1212 = vmatpush.msrb.mxu3 %v807_v5  ;;  %v882_v5 = vperm.slane %v872_v51, 6 }
 0x140   :  { %1153 = vmatpush.msrb.mxu0 %v788_v6  ;;  %1173 = vmatpush.msrb.mxu1 %v789_v7  ;;  %v883_v6 = vperm.slane %v872_v51, 7 }
 0x141   :  { %1193 = vmatpush.msrb.mxu2 %v790_v8  ;;  %1213 = vmatpush.msrb.mxu3 %v791_v9 }
 0x142   :  { %1154 = vmatpush.msrb.mxu0 %v772_v10  ;;  %1174 = vmatpush.msrb.mxu1 %v773_v11  ;;  %v873_v11 = vld [vmem:[%s2942_s4 + $0x8] sm:$0xff] }
 0x143   :  { %1194 = vmatpush.msrb.mxu2 %v774_v12  ;;  %1214 = vmatpush.msrb.mxu3 %v775_v13  ;;  %v884_v12 = vperm.slane %v873_v11, 0  ;;  %v885_v13 = vperm.slane %v873_v11, 1 }
 0x144   :  { %1155 = vmatpush.msrb.mxu0 %v756_v14  ;;  %1175 = vmatpush.msrb.mxu1 %v757_v15 }
 0x145   :  { %1195 = vmatpush.msrb.mxu2 %v758_v16  ;;  %1215 = vmatpush.msrb.mxu3 %v759_v17 }
 0x146   :  { %1156 = vmatpush.msrb.mxu0 %v740_v18  ;;  %1176 = vmatpush.msrb.mxu1 %v741_v19  ;;  %v886_v18 = vperm.slane %v873_v11, 2  ;;  %v887_v19 = vperm.slane %v873_v11, 3 }
 0x147   :  { %1196 = vmatpush.msrb.mxu2 %v742_v20  ;;  %1216 = vmatpush.msrb.mxu3 %v743_v21 }
 0x148   :  { %1157 = vmatpush.msrb.mxu0 %v724_v22  ;;  %1177 = vmatpush.msrb.mxu1 %v725_v23 }
 0x149   :  { %1197 = vmatpush.msrb.mxu2 %v726_v24  ;;  %1217 = vmatpush.msrb.mxu3 %v727_v25  ;;  %v888_v24 = vperm.slane %v873_v11, 4  ;;  %v889_v25 = vperm.slane %v873_v11, 5 }
 0x14a   :  { %1158 = vmatpush.msrb.mxu0 %v708_v26  ;;  %1178 = vmatpush.msrb.mxu1 %v709_v27 }
 0x14b   :  { %1198 = vmatpush.msrb.mxu2 %v710_v28  ;;  %1218 = vmatpush.msrb.mxu3 %v711_v29 }
 0x14c   :  { %1159 = vmatpush.msrb.mxu0 %v692_v30  ;;  %1179 = vmatpush.msrb.mxu1 %v693_v31  ;;  %v890_v30 = vperm.slane %v873_v11, 6  ;;  %v891_v31 = vperm.slane %v873_v11, 7 }
 0x14d   :  { %1199 = vmatpush.msrb.mxu2 %v694_v32  ;;  %1219 = vmatpush.msrb.mxu3 %v695_v33 }
 0x14e   :  { %1160 = vmatpush.msrb.mxu0 %v676_v34  ;;  %1180 = vmatpush.msrb.mxu1 %v677_v35 }
 0x14f   :  { %1200 = vmatpush.msrb.mxu2 %v678_v36  ;;  %1220 = vmatpush.msrb.mxu3 %v679_v37 }
 0x150   :  { %1161 = vmatpush.msrb.mxu0 %v660_v38  ;;  %1181 = vmatpush.msrb.mxu1 %v661_v39 }
 0x151   :  { %1201 = vmatpush.msrb.mxu2 %v662_v40  ;;  %1221 = vmatpush.msrb.mxu3 %v663_v41 }
 0x152   :  { %1162 = vmatpush.msrb.mxu0 %v644_v42  ;;  %1182 = vmatpush.msrb.mxu1 %v645_v43 }
 0x153   :  { %1202 = vmatpush.msrb.mxu2 %v646_v44  ;;  %1222 = vmatpush.msrb.mxu3 %v647_v45 }
 0x154   :  { %1163 = vmatpush.msrb.mxu0 %v628_v46  ;;  %1183 = vmatpush.msrb.mxu1 %v629_v47 }
 0x155   :  { %1203 = vmatpush.msrb.mxu2 %v630_v49  ;;  %1223 = vmatpush.msrb.mxu3 %v631_v50 }
 0x156   :  { %1164 = vmatmul.f32.vlgmr.msrb.gmra.mxu0 %v2482_v48  ;;  %1184 = vmatmul.f32.vlgmr.msrb.gmra.mxu1 %v2482_v48 }
 0x157   :  { %1204 = vmatmul.f32.vlgmr.msrb.gmra.mxu2 %v2482_v48  ;;  %1224 = vmatmul.f32.vlgmr.msrb.gmra.mxu3 %v2482_v48  ;;  %v879_v48 = vperm.slane %v872_v51, 3 }
 0x18d   :  { %v925_v54 = vpop.f32.mrf.mxu0  ;;  %v945_v55 = vpop.f32.mrf.mxu1 }
 0x18e   :  { %v926_v56 = vadd.f32 %v925_v54, %v876_v52  ;;  %v946_v57 = vadd.f32 %v945_v55, %v877_v53 }
 0x190   :  { %1228 = vst [vmem:[%s2943_s5] sm:$0xff] %v926_v56 }
 0x191   :  { %1229 = vst [vmem:[%s2943_s5 + $0x8] sm:$0xff] %v946_v57 }
 0x194   :  { %v965_v59 = vpop.f32.mrf.mxu2  ;;  %v985_v60 = vpop.f32.mrf.mxu3 }
 0x195   :  { %v966_v63 = vadd.f32 %v965_v59, %v878_v58  ;;  %v986_v0 = vadd.f32 %v985_v60, %v879_v48 }
 0x197   :  { %1230 = vst [vmem:[%s2943_s5 + $0x10] sm:$0xff] %v966_v63  ;;  %v1005_v1 = vpop.f32.mrf.mxu0  ;;  %v1025_v2 = vpop.f32.mrf.mxu1 }
 0x198   :  { %1231 = vst [vmem:[%s2943_s5 + $0x18] sm:$0xff] %v986_v0  ;;  %v1006_v3 = vadd.f32 %v1005_v1, %v880_v61  ;;  %v1026_v4 = vadd.f32 %v1025_v2, %v881_v62 }
 0x19a   :  { %1232 = vst [vmem:[%s2943_s5 + $0x20] sm:$0xff] %v1006_v3 }
 0x19b   :  { %1233 = vst [vmem:[%s2943_s5 + $0x28] sm:$0xff] %v1026_v4 }
 0x19e   :  { %v1045_v7 = vpop.f32.mrf.mxu2  ;;  %v1065_v8 = vpop.f32.mrf.mxu3 }
 0x19f   :  { %v1046_v9 = vadd.f32 %v1045_v7, %v882_v5  ;;  %v1066_v10 = vadd.f32 %v1065_v8, %v883_v6 }
 0x1a1   :  { %1234 = vst [vmem:[%s2943_s5 + $0x30] sm:$0xff] %v1046_v9 }
 0x1a2   :  { %1235 = vst [vmem:[%s2943_s5 + $0x38] sm:$0xff] %v1066_v10 }
 0x1b1   :  { %v1085_v14 = vpop.f32.mrf.mxu0  ;;  %v1105_v15 = vpop.f32.mrf.mxu1 }
 0x1b2   :  { %v1086_v16 = vadd.f32 %v1085_v14, %v884_v12  ;;  %v1106_v17 = vadd.f32 %v1105_v15, %v885_v13 }
 0x1b4   :  { %1236 = vst [vmem:[%s2943_s5 + $0x40] sm:$0xff] %v1086_v16 }
 0x1b5   :  { %1237 = vst [vmem:[%s2943_s5 + $0x48] sm:$0xff] %v1106_v17 }
 0x1b8   :  { %v1125_v20 = vpop.f32.mrf.mxu2  ;;  %v1145_v21 = vpop.f32.mrf.mxu3 }
 0x1b9   :  { %v1126_v22 = vadd.f32 %v1125_v20, %v886_v18  ;;  %v1146_v23 = vadd.f32 %v1145_v21, %v887_v19 }
 0x1bb   :  { %1238 = vst [vmem:[%s2943_s5 + $0x50] sm:$0xff] %v1126_v22 }
 0x1bc   :  { %1239 = vst [vmem:[%s2943_s5 + $0x58] sm:$0xff] %v1146_v23 }
 0x1d3   :  { %v1165_v26 = vpop.f32.mrf.mxu0  ;;  %v1185_v27 = vpop.f32.mrf.mxu1 }
 0x1d4   :  { %v1166_v28 = vadd.f32 %v1165_v26, %v888_v24  ;;  %v1186_v29 = vadd.f32 %v1185_v27, %v889_v25 }
 0x1d6   :  { %1240 = vst [vmem:[%s2943_s5 + $0x60] sm:$0xff] %v1166_v28 }
 0x1d7   :  { %1241 = vst [vmem:[%s2943_s5 + $0x68] sm:$0xff] %v1186_v29 }
 0x1da   :  { %v1205_v32 = vpop.f32.mrf.mxu2  ;;  %v1225_v33 = vpop.f32.mrf.mxu3 }
 0x1db   :  { %v1206_v34 = vadd.f32 %v1205_v32, %v890_v30  ;;  %v1226_v35 = vadd.f32 %v1225_v33, %v891_v31 }
 0x1dd   :  { %1242 = vst [vmem:[%s2943_s5 + $0x70] sm:$0xff] %v1206_v34 }
 0x1de   :  { %1243 = vst [vmem:[%s2943_s5 + $0x78] sm:$0xff] %v1226_v35 }

</bundles_post_ra>
